<compile_context>
chip_gen: v5e
topology: v5e:2x2
jax: 0.10.0
libtpu: 0.0.40
codegen_flags: <defaults>
</compile_context>

<pallas_src>
import math
import functools

import jax
import jax.numpy as jnp
from jax.experimental import pallas as pl
from jax.experimental.pallas import tpu as pltpu


_VMEM_LIMIT_BYTES = 32 * 1024 * 1024    # safe scoped-VMEM request on v5e / v6e / v7x
_STREAM_BUDGET_BYTES = 12 * 1024 * 1024  # budget for the double-buffered adj/edge stream


# ------------------------------------------------------------------
# Pallas kernel: one TransformerConv(beta=True) + LayerNorm + LeakyReLU layer,
# computed for one tile of destination nodes (all source nodes visible).
# ------------------------------------------------------------------
def _transformer_layer_kernel(xs_ref, xd_ref, adj_ref, ed_ref,
                              w_all_ref, b_all_ref, we_ref,
                              wbo_ref, wbx_ref, lnw_ref, lnb_ref,
                              out_ref, *, heads, out_ch):
    H, C = heads, out_ch
    HC = H * C
    cdt = xs_ref.dtype                       # compute (MXU operand) dtype: bf16 or f32

    x_src = xs_ref[...]                      # [N, Fin]  all source nodes (VMEM resident)
    x_dst = xd_ref[...]                      # [T, Fin]  this tile's destination nodes
    adj = adj_ref[...]                       # [T, N]    adj[t, s] = 1 iff edge s -> t
    ed = ed_ref[...]                         # [T, N, E] dense edge attrs (0 where no edge)
    w_all = w_all_ref[...]                   # [Fin, 4*HC]  fused [wq | wk | wv | wskip]
    b_all = b_all_ref[...]                   # [1, 4*HC]    f32 fused biases
    we3 = we_ref[...]                        # [E, H, C]    edge projection

    T = x_dst.shape[0]
    N = x_src.shape[0]

    # Fused input projections: one wide MXU matmul per side (f32 accumulation).
    src_proj = jnp.dot(x_src, w_all, preferred_element_type=jnp.float32) + b_all  # [N, 4HC]
    dst_proj = jnp.dot(x_dst, w_all, preferred_element_type=jnp.float32) + b_all  # [T, 4HC]

    q3 = dst_proj[:, 0 * HC:1 * HC].reshape(T, H, C)
    k3 = src_proj[:, 1 * HC:2 * HC].reshape(N, H, C)
    v3 = src_proj[:, 2 * HC:3 * HC].reshape(N, H, C)
    xr = dst_proj[:, 3 * HC:4 * HC]                                   # [T, HC] skip branch

    q3c = q3.astype(cdt)
    k3c = k3.astype(cdt)
    v3c = v3.astype(cdt)

    # Attention logits  q_i . (k_j + We e_ij) / sqrt(C), without materializing We e_ij:
    #   edge score term = <e_ij, q_i @ We^T>.
    u = jnp.einsum('thc,ehc->the', q3c, we3,
                   preferred_element_type=jnp.float32)                # [T, H, E]
    s_qk = jnp.einsum('thc,shc->hts', q3c, k3c,
                      preferred_element_type=jnp.float32)             # [H, T, N]
    s_e = jnp.einsum('tse,the->hts', ed, u.astype(cdt),
                     preferred_element_type=jnp.float32)              # [H, T, N]
    scale = jnp.float32(1.0 / math.sqrt(C))
    scores = (s_qk + s_e) * scale

    # Masked softmax over source nodes (per destination row); math kept in f32.
    mask = (adj > 0)[None]                                            # [1, T, N]
    masked = jnp.where(mask, scores, jnp.float32(-1e30))
    m = jnp.max(masked, axis=-1, keepdims=True)
    ex = jnp.where(mask, jnp.exp(masked - m), jnp.float32(0.0))
    denom = jnp.sum(ex, axis=-1, keepdims=True)
    alpha = ex * pl.reciprocal(jnp.maximum(denom, jnp.float32(1e-30)), approx=True)

    # Weighted aggregation of (v_j + We e_ij); edge term folded back through We.
    alpha_c = alpha.astype(cdt)
    out_v = jnp.einsum('hts,shc->thc', alpha_c, v3c,
                       preferred_element_type=jnp.float32)            # [T, H, C]
    agg_e = jnp.einsum('hts,tse->the', alpha_c, ed,
                       preferred_element_type=jnp.float32)            # [T, H, E]
    out_e = jnp.einsum('the,ehc->thc', agg_e.astype(cdt), we3,
                       preferred_element_type=jnp.float32)            # [T, H, C]
    o = (out_v + out_e).reshape(T, HC)                                # concat=True layout

    # Beta-gated skip:  sigmoid([o, xr, o-xr] @ wbeta) folded into two lane reductions.
    beta_logit = (jnp.sum(o * wbo_ref[...], axis=-1, keepdims=True)
                  + jnp.sum(xr * wbx_ref[...], axis=-1, keepdims=True))   # [T, 1]
    beta = jax.nn.sigmoid(beta_logit)
    y = beta * xr + (1.0 - beta) * o

    # LayerNorm(HC), eps=1e-5, then LeakyReLU(0.01).
    mu = jnp.mean(y, axis=-1, keepdims=True)
    var = jnp.mean((y - mu) ** 2, axis=-1, keepdims=True)
    yn = (y - mu) * jax.lax.rsqrt(var + 1e-5) * lnw_ref[...] + lnb_ref[...]
    out_ref[...] = jnp.where(yn >= 0, yn, 0.01 * yn).astype(out_ref.dtype)


# ------------------------------------------------------------------
# wrapper helpers
# ------------------------------------------------------------------
def _pick_dst_tile(N, E, elem_bytes, gran, budget_bytes=_STREAM_BUDGET_BYTES):
    """Largest destination tile (multiple of `gran`, dividing N) whose double-buffered
    adj + dense-edge stream fits the VMEM budget."""
    per_row = 2 * N * (1 + E) * elem_bytes          # adj row + edge rows, x2 double buffering
    cap = int(budget_bytes // max(per_row, 1))
    if cap >= N:
        return N
    t = max(gran, (cap // gran) * gran)
    while t > gran and N % t:
        t -= gran
    return t if N % t == 0 else N


def _pack_layer_params(p, heads, out_ch, compute_dtype):
    """Fuse / reshape the per-layer parameters for the kernel."""
    hc = heads * out_ch
    w_all = jnp.concatenate([p["wq"], p["wk"], p["wv"], p["wskip"]], axis=1)   # [Fin, 4HC]
    b_all = jnp.concatenate([p["bq"], p["bk"], p["bv"], p["bskip"]], axis=1)   # [1, 4HC]
    we3 = p["we"].reshape(p["we"].shape[0], heads, out_ch)                     # [E, H, C]
    wb = p["wbeta"][:, 0]
    wbo = (wb[:hc] + wb[2 * hc:]).reshape(1, hc)        # weight on o     (w1 + w3)
    wbx = (wb[hc:2 * hc] - wb[2 * hc:]).reshape(1, hc)  # weight on xr    (w2 - w3)
    return dict(
        w_all=w_all.astype(compute_dtype),
        b_all=b_all.astype(jnp.float32),
        we3=we3.astype(compute_dtype),
        wbo=wbo.astype(jnp.float32),
        wbx=wbx.astype(jnp.float32),
        lnw=p["lnw"].astype(jnp.float32),
        lnb=p["lnb"].astype(jnp.float32),
    )


def transformer_conv_layer(x, adj_c, ed_c, packed, heads, out_ch, *,
                           compute_dtype=jnp.bfloat16, tile_dst=None):
    N, fin = x.shape
    E = ed_c.shape[-1]
    hc = heads * out_ch
    elem = jnp.dtype(compute_dtype).itemsize
    gran = 16 if elem < 4 else 8                       # sublane granularity for the tile dim
    T = tile_dst if tile_dst is not None else _pick_dst_tile(N, E, elem, gran)
    if T != N and (T % gran or N % T):
        raise ValueError(f"tile_dst={T} must divide N={N} and be a multiple of {gran}")

    x_c = x.astype(compute_dtype)
    kernel = functools.partial(_transformer_layer_kernel, heads=heads, out_ch=out_ch)

    in_specs = [
        pl.BlockSpec((N, fin), lambda i: (0, 0)),        # x, all source nodes (resident)
        pl.BlockSpec((T, fin), lambda i: (i, 0)),        # x, destination tile
        pl.BlockSpec((T, N), lambda i: (i, 0)),          # adjacency tile (streamed)
        pl.BlockSpec((T, N, E), lambda i: (i, 0, 0)),    # dense edge tile (streamed)
        pl.BlockSpec((fin, 4 * hc), lambda i: (0, 0)),   # fused projection weights
        pl.BlockSpec((1, 4 * hc), lambda i: (0, 0)),     # fused biases
        pl.BlockSpec((E, heads, out_ch), lambda i: (0, 0, 0)),  # edge projection
        pl.BlockSpec((1, hc), lambda i: (0, 0)),         # beta weight on o
        pl.BlockSpec((1, hc), lambda i: (0, 0)),         # beta weight on xr
        pl.BlockSpec((1, hc), lambda i: (0, 0)),         # LayerNorm gamma
        pl.BlockSpec((1, hc), lambda i: (0, 0)),         # LayerNorm beta
    ]
    out_specs = pl.BlockSpec((T, hc), lambda i: (i, 0))

    return pl.pallas_call(
        kernel,
        out_shape=jax.ShapeDtypeStruct((N, hc), jnp.float32),
        grid=(N // T,),
        in_specs=in_specs,
        out_specs=out_specs,
        compiler_params=pltpu.CompilerParams(
            dimension_semantics=("parallel",),           # shard dst tiles across v7x's 2 TCs
            vmem_limit_bytes=_VMEM_LIMIT_BYTES),
    )(x_c, x_c, adj_c, ed_c, packed["w_all"], packed["b_all"], packed["we3"],
      packed["wbo"], packed["wbx"], packed["lnw"], packed["lnb"])


def multi_transformer(x, edge_index, edge_attr, params, heads, out_ch, *,
                      compute_dtype=jnp.bfloat16, tile_dst=None):
    """MultiTransformer.forward (mean_at_end=False)."""
    N = x.shape[0]
    E = edge_attr.shape[1]
    src, dst = edge_index[0], edge_index[1]
    # glue: densify the sparse graph once; reused (streamed) by every layer.
    # TODO(synk): duplicate (src, dst) pairs collapse (last write wins) in this dense
    #             formulation, whereas PyG sums one message per duplicate edge.
    adj = jnp.zeros((N, N), jnp.float32).at[dst, src].set(1.0)
    ed = jnp.zeros((N, N, E), jnp.float32).at[dst, src].set(edge_attr)
    adj_c = adj.astype(compute_dtype)
    ed_c = ed.astype(compute_dtype)
    # TODO(synk): for deep stacks, fold the layer loop into a single pallas_call with a
    #             leading "arbitrary" layer axis so adj/ed stay VMEM-resident across layers.
    for p in params:
        packed = _pack_layer_params(p, heads, out_ch, compute_dtype)
        x = transformer_conv_layer(x, adj_c, ed_c, packed, heads, out_ch,
                                   compute_dtype=compute_dtype, tile_dst=tile_dst)
    return x


# ------------------------------------------------------------------
# Pure-JAX reference (edge-list / PyG semantics) for validation
# ------------------------------------------------------------------
def _ref_layer(x, edge_index, edge_attr, p, heads, out_ch):
    N = x.shape[0]
    H, C = heads, out_ch
    src, dst = edge_index[0], edge_index[1]
    q = (x @ p["wq"] + p["bq"]).reshape(N, H, C)
    k = (x @ p["wk"] + p["bk"]).reshape(N, H, C)
    v = (x @ p["wv"] + p["bv"]).reshape(N, H, C)
    e = (edge_attr @ p["we"]).reshape(-1, H, C)
    kj = k[src] + e
    alpha = (q[dst] * kj).sum(-1) / math.sqrt(C)                       # [Eg, H]
    amax = jax.ops.segment_max(alpha, dst, num_segments=N)
    ex = jnp.exp(alpha - amax[dst])
    denom = jax.ops.segment_sum(ex, dst, num_segments=N)
    alpha = ex / denom[dst]
    msg = (v[src] + e) * alpha[:, :, None]
    out = jax.ops.segment_sum(msg, dst, num_segments=N).reshape(N, H * C)
    xr = x @ p["wskip"] + p["bskip"]
    beta = jax.nn.sigmoid(jnp.concatenate([out, xr, out - xr], -1) @ p["wbeta"])
    y = beta * xr + (1.0 - beta) * out
    mu = y.mean(-1, keepdims=True)
    var = ((y - mu) ** 2).mean(-1, keepdims=True)
    yn = (y - mu) / jnp.sqrt(var + 1e-5) * p["lnw"] + p["lnb"]
    return jnp.where(yn >= 0, yn, 0.01 * yn)


def multi_transformer_ref(x, edge_index, edge_attr, params, heads, out_ch):
    for p in params:
        x = _ref_layer(x, edge_index, edge_attr, p, heads, out_ch)
    return x


# ------------------------------------------------------------------
# deterministic parameter init (shapes follow TransformerConv.__init__)
# ------------------------------------------------------------------
def init_layer_params(key, fin, out_ch, heads, edge_size):
    hc = heads * out_ch
    ks = jax.random.split(key, 10)
    s = 0.2
    rnd = lambda k, shape: s * jax.random.normal(k, shape, jnp.float32)
    return dict(
        wq=rnd(ks[0], (fin, hc)),      bq=rnd(ks[1], (1, hc)),
        wk=rnd(ks[2], (fin, hc)),      bk=rnd(ks[3], (1, hc)),
        wv=rnd(ks[4], (fin, hc)),      bv=rnd(ks[5], (1, hc)),
        we=rnd(ks[6], (edge_size, hc)),                     # lin_edge (no bias)
        wskip=rnd(ks[7], (fin, hc)),   bskip=rnd(ks[8], (1, hc)),
        wbeta=rnd(ks[9], (3 * hc, 1)),                      # lin_beta (no bias)
        lnw=jnp.ones((1, hc), jnp.float32),                 # LayerNorm defaults
        lnb=jnp.zeros((1, hc), jnp.float32),
    )


def _quantize_params_for_bf16_ref(p):
    q = dict(p)
    for name in ("wq", "wk", "wv", "wskip", "we"):
        q[name] = p[name].astype(jnp.bfloat16).astype(jnp.float32)
    return q


# TODO(synk): attention dropout inside TransformerConv.message is p=0.0 by default -> no-op here.

if __name__ == "__main__":
    N = 32                # number of graph nodes
    input_size = 8
    output_size = 8
    edge_size = 4
    heads = 2
    layers = 2
    mid = output_size * heads
    tile_dst = 16         # force a 2-step destination-tile grid at toy size

    # graph: ring edges + skip-3 edges => every node has incoming edges, no duplicate pairs
    idx = jnp.arange(N, dtype=jnp.int32)
    src = jnp.concatenate([idx, idx])
    dst = jnp.concatenate([(idx + 1) % N, (idx + 3) % N])
    edge_index = jnp.stack([src, dst])          # [2, E]
    E = edge_index.shape[1]

    key = jax.random.PRNGKey(0)
    keys = jax.random.split(key, 2 + layers)
    x = jax.random.normal(keys[0], (N, input_size), jnp.float32)
    edge_attr = jax.random.normal(keys[1], (E, edge_size), jnp.float32)

    params = []
    for l in range(layers):
        fin = input_size if l == 0 else mid
        params.append(init_layer_params(keys[2 + l], fin, output_size, heads, edge_size))

    ref = multi_transformer_ref(x, edge_index, edge_attr, params, heads, output_size)

    # f32 compute path: tight numerical check of the kernel structure.
    out_f32 = multi_transformer(x, edge_index, edge_attr, params, heads, output_size,
                                compute_dtype=jnp.float32, tile_dst=tile_dst)
    out_f32 = jax.block_until_ready(out_f32)
    assert out_f32.shape == (N, mid), out_f32.shape
    err32 = float(jnp.max(jnp.abs(out_f32 - ref)))
    assert jnp.allclose(out_f32, ref, rtol=1e-2, atol=1e-2), f"f32 max abs err {err32}"

    # bf16 MXU path (default, targets v6e/v7x): compare vs a bf16-quantized-input reference.
    out_bf16 = multi_transformer(x, edge_index, edge_attr, params, heads, output_size,
                                 compute_dtype=jnp.bfloat16, tile_dst=tile_dst)
    out_bf16 = jax.block_until_ready(out_bf16)
    qd = lambda a: a.astype(jnp.bfloat16).astype(jnp.float32)
    params_q = [_quantize_params_for_bf16_ref(p) for p in params]
    ref_q = multi_transformer_ref(qd(x), edge_index, qd(edge_attr), params_q,
                                  heads, output_size)
    errb = float(jnp.max(jnp.abs(out_bf16 - ref_q)))
    assert jnp.allclose(out_bf16, ref_q, rtol=1e-1, atol=1e-1), f"bf16 max abs err {errb}"

    print("KERNEL_OK")
</pallas_src>

<mosaic_0001>
module attributes {stable_mosaic.version = 11 : i64} {
  func.func @_transformer_layer_kernel(%arg0: i32, %arg1: memref<32x8xf32, #tpu.memory_space<vmem>>, %arg2: memref<16x8xf32, #tpu.memory_space<vmem>>, %arg3: memref<16x32xf32, #tpu.memory_space<vmem>>, %arg4: memref<16x32x4xf32, #tpu.memory_space<vmem>>, %arg5: memref<8x64xf32, #tpu.memory_space<vmem>>, %arg6: memref<1x64xf32, #tpu.memory_space<vmem>>, %arg7: memref<4x2x8xf32, #tpu.memory_space<vmem>>, %arg8: memref<1x16xf32, #tpu.memory_space<vmem>>, %arg9: memref<1x16xf32, #tpu.memory_space<vmem>>, %arg10: memref<1x16xf32, #tpu.memory_space<vmem>>, %arg11: memref<1x16xf32, #tpu.memory_space<vmem>>, %arg12: memref<16x16xf32, #tpu.memory_space<vmem>>) attributes {dimension_semantics = [#tpu.dimension_semantics<parallel>], iteration_bounds = array<i64: 2>, scalar_prefetch = 0 : i64, scratch_operands = 0 : i64, tpu.core_type = #tpu.core_type<tc>, window_params = [{pipeline_mode = #tpu.pipeline_mode<synchronous>, transform_indices = @transform_0, window_bounds = array<i64: 32, 8>}, {transform_indices = @transform_1, window_bounds = array<i64: 16, 8>}, {transform_indices = @transform_2, window_bounds = array<i64: 16, 32>}, {transform_indices = @transform_3, window_bounds = array<i64: 16, 32, 4>}, {pipeline_mode = #tpu.pipeline_mode<synchronous>, transform_indices = @transform_4, window_bounds = array<i64: 8, 64>}, {pipeline_mode = #tpu.pipeline_mode<synchronous>, transform_indices = @transform_5, window_bounds = array<i64: 1, 64>}, {pipeline_mode = #tpu.pipeline_mode<synchronous>, transform_indices = @transform_6, window_bounds = array<i64: 4, 2, 8>}, {pipeline_mode = #tpu.pipeline_mode<synchronous>, transform_indices = @transform_7, window_bounds = array<i64: 1, 16>}, {pipeline_mode = #tpu.pipeline_mode<synchronous>, transform_indices = @transform_8, window_bounds = array<i64: 1, 16>}, {pipeline_mode = #tpu.pipeline_mode<synchronous>, transform_indices = @transform_9, window_bounds = array<i64: 1, 16>}, {pipeline_mode = #tpu.pipeline_mode<synchronous>, transform_indices = @transform_10, window_bounds = array<i64: 1, 16>}, {transform_indices = @transform_11, window_bounds = array<i64: 16, 16>}]} {
    %c0 = arith.constant 0 : index
    %c0_0 = arith.constant 0 : index
    %0 = vector.load %arg1[%c0, %c0_0] : memref<32x8xf32, #tpu.memory_space<vmem>>, vector<32x8xf32>
    %c0_1 = arith.constant 0 : index
    %c0_2 = arith.constant 0 : index
    %1 = vector.load %arg2[%c0_1, %c0_2] : memref<16x8xf32, #tpu.memory_space<vmem>>, vector<16x8xf32>
    %c0_3 = arith.constant 0 : index
    %c0_4 = arith.constant 0 : index
    %2 = vector.load %arg3[%c0_3, %c0_4] : memref<16x32xf32, #tpu.memory_space<vmem>>, vector<16x32xf32>
    %c0_5 = arith.constant 0 : index
    %c0_6 = arith.constant 0 : index
    %c0_7 = arith.constant 0 : index
    %3 = vector.load %arg4[%c0_5, %c0_6, %c0_7] : memref<16x32x4xf32, #tpu.memory_space<vmem>>, vector<16x32x4xf32>
    %c0_8 = arith.constant 0 : index
    %c0_9 = arith.constant 0 : index
    %4 = vector.load %arg5[%c0_8, %c0_9] : memref<8x64xf32, #tpu.memory_space<vmem>>, vector<8x64xf32>
    %c0_10 = arith.constant 0 : index
    %c0_11 = arith.constant 0 : index
    %5 = vector.load %arg6[%c0_10, %c0_11] : memref<1x64xf32, #tpu.memory_space<vmem>>, vector<1x64xf32>
    %c0_12 = arith.constant 0 : index
    %c0_13 = arith.constant 0 : index
    %c0_14 = arith.constant 0 : index
    %6 = vector.load %arg7[%c0_12, %c0_13, %c0_14] : memref<4x2x8xf32, #tpu.memory_space<vmem>>, vector<4x2x8xf32>
    %cst = arith.constant dense<0.000000e+00> : vector<32x64xf32>
    %7 = tpu.matmul %0, %4, %cst {dimension_numbers = #tpu.dot_dimension_numbers<[1], [0], [0], [1], [0, 0, 1, 1], [], []>} : vector<32x8xf32>, vector<8x64xf32>, vector<32x64xf32> -> vector<32x64xf32>
    %8 = vector.broadcast %5 : vector<1x64xf32> to vector<32x64xf32>
    %9 = arith.addf %7, %8 : vector<32x64xf32>
    %cst_15 = arith.constant dense<0.000000e+00> : vector<16x64xf32>
    %10 = tpu.matmul %1, %4, %cst_15 {dimension_numbers = #tpu.dot_dimension_numbers<[1], [0], [0], [1], [0, 0, 1, 1], [], []>} : vector<16x8xf32>, vector<8x64xf32>, vector<16x64xf32> -> vector<16x64xf32>
    %11 = vector.broadcast %5 : vector<1x64xf32> to vector<16x64xf32>
    %12 = arith.addf %10, %11 : vector<16x64xf32>
    %13 = vector.extract_strided_slice %12 {offsets = [0, 0], sizes = [16, 16], strides = [1, 1]} : vector<16x64xf32> to vector<16x16xf32>
    %14 = vector.shape_cast %13 : vector<16x16xf32> to vector<16x2x8xf32>
    %15 = vector.extract_strided_slice %9 {offsets = [0, 16], sizes = [32, 16], strides = [1, 1]} : vector<32x64xf32> to vector<32x16xf32>
    %16 = vector.shape_cast %15 : vector<32x16xf32> to vector<32x2x8xf32>
    %17 = vector.extract_strided_slice %9 {offsets = [0, 32], sizes = [32, 16], strides = [1, 1]} : vector<32x64xf32> to vector<32x16xf32>
    %18 = vector.shape_cast %17 : vector<32x16xf32> to vector<32x2x8xf32>
    %19 = vector.extract_strided_slice %12 {offsets = [0, 48], sizes = [16, 16], strides = [1, 1]} : vector<16x64xf32> to vector<16x16xf32>
    "tpu.trace_start"() <{level = 10 : i32, message = "thc,ehc->the"}> : () -> ()
    %cst_16 = arith.constant dense<0.000000e+00> : vector<2x4x16xf32>
    %20 = tpu.matmul %6, %14, %cst_16 {dimension_numbers = #tpu.dot_dimension_numbers<[2], [2], [0], [0], [0, 1, 0, 0, 1, 0], [1], [1]>} : vector<4x2x8xf32>, vector<16x2x8xf32>, vector<2x4x16xf32> -> vector<2x4x16xf32>
    %21 = tpu.transpose %20, [2, 0, 1] : vector<2x4x16xf32> -> vector<16x2x4xf32>
    "tpu.trace_stop"() : () -> ()
    "tpu.trace_start"() <{level = 10 : i32, message = "thc,shc->hts"}> : () -> ()
    %cst_17 = arith.constant dense<0.000000e+00> : vector<2x16x32xf32>
    %22 = tpu.matmul %14, %16, %cst_17 {dimension_numbers = #tpu.dot_dimension_numbers<[2], [2], [0], [0], [0, 1, 0, 0, 1, 0], [1], [1]>} : vector<16x2x8xf32>, vector<32x2x8xf32>, vector<2x16x32xf32> -> vector<2x16x32xf32>
    "tpu.trace_stop"() : () -> ()
    "tpu.trace_start"() <{level = 10 : i32, message = "tse,the->hts"}> : () -> ()
    %cst_18 = arith.constant dense<0.000000e+00> : vector<16x2x32xf32>
    %23 = tpu.matmul %21, %3, %cst_18 {dimension_numbers = #tpu.dot_dimension_numbers<[2], [2], [1], [1], [0, 0, 0, 1, 1, 1], [0], [0]>} : vector<16x2x4xf32>, vector<16x32x4xf32>, vector<16x2x32xf32> -> vector<16x2x32xf32>
    %24 = tpu.transpose %23, [1, 0, 2] : vector<16x2x32xf32> -> vector<2x16x32xf32>
    "tpu.trace_stop"() : () -> ()
    %25 = arith.addf %22, %24 : vector<2x16x32xf32>
    %cst_19 = arith.constant 0.353553385 : f32
    %26 = vector.broadcast %cst_19 : f32 to vector<2x16x32xf32>
    %27 = arith.mulf %25, %26 : vector<2x16x32xf32>
    %cst_20 = arith.constant 0.000000e+00 : f32
    %28 = vector.broadcast %cst_20 : f32 to vector<16x32xf32>
    %29 = arith.cmpf ogt, %2, %28 : vector<16x32xf32>
    %30 = vector.shape_cast %29 : vector<16x32xi1> to vector<1x16x32xi1>
    %cst_21 = arith.constant -1.000000e+30 : f32
    %31 = vector.shape_cast %30 : vector<1x16x32xi1> to vector<1x16x32xi1>
    %32 = vector.broadcast %31 : vector<1x16x32xi1> to vector<2x16x32xi1>
    %33 = vector.broadcast %cst_21 : f32 to vector<2x16x32xf32>
    %34 = arith.select %32, %27, %33 : vector<2x16x32xi1>, vector<2x16x32xf32>
    %cst_22 = arith.constant dense<0xFF800000> : vector<2x16xf32>
    %35 = vector.multi_reduction <maximumf>, %34, %cst_22 [2] : vector<2x16x32xf32> to vector<2x16xf32>
    %36 = vector.shape_cast %35 : vector<2x16xf32> to vector<2x16x1xf32>
    %37 = vector.broadcast %36 : vector<2x16x1xf32> to vector<2x16x32xf32>
    %38 = arith.subf %34, %37 : vector<2x16x32xf32>
    %39 = math.exp %38 : vector<2x16x32xf32>
    %cst_23 = arith.constant 0.000000e+00 : f32
    %40 = vector.shape_cast %30 : vector<1x16x32xi1> to vector<1x16x32xi1>
    %41 = vector.broadcast %40 : vector<1x16x32xi1> to vector<2x16x32xi1>
    %42 = vector.broadcast %cst_23 : f32 to vector<2x16x32xf32>
    %43 = arith.select %41, %39, %42 : vector<2x16x32xi1>, vector<2x16x32xf32>
    %cst_24 = arith.constant dense<0.000000e+00> : vector<2x16xf32>
    %44 = vector.multi_reduction <add>, %43, %cst_24 [2] : vector<2x16x32xf32> to vector<2x16xf32>
    %45 = vector.shape_cast %44 : vector<2x16xf32> to vector<2x16x1xf32>
    %cst_25 = arith.constant 1.000000e-30 : f32
    %46 = vector.broadcast %cst_25 : f32 to vector<2x16x1xf32>
    %47 = arith.maximumf %45, %46 : vector<2x16x1xf32>
    %48 = tpu.reciprocal %47 {approx = true} : vector<2x16x1xf32> -> vector<2x16x1xf32>
    %49 = vector.broadcast %48 : vector<2x16x1xf32> to vector<2x16x32xf32>
    %50 = arith.mulf %43, %49 : vector<2x16x32xf32>
    "tpu.trace_start"() <{level = 10 : i32, message = "hts,shc->thc"}> : () -> ()
    %cst_26 = arith.constant dense<0.000000e+00> : vector<2x8x16xf32>
    %51 = tpu.matmul %18, %50, %cst_26 {dimension_numbers = #tpu.dot_dimension_numbers<[0], [2], [2], [1], [0, 1, 0, 2, 1, 1], [1], [0]>} : vector<32x2x8xf32>, vector<2x16x32xf32>, vector<2x8x16xf32> -> vector<2x8x16xf32>
    %52 = tpu.transpose %51, [2, 0, 1] : vector<2x8x16xf32> -> vector<16x2x8xf32>
    "tpu.trace_stop"() : () -> ()
    "tpu.trace_start"() <{level = 10 : i32, message = "hts,tse->the"}> : () -> ()
    %cst_27 = arith.constant dense<0.000000e+00> : vector<16x2x4xf32>
    %53 = tpu.matmul %50, %3, %cst_27 {dimension_numbers = #tpu.dot_dimension_numbers<[2], [1], [0], [2], [0, 1, 0, 0, 1, 2], [1], [0]>} : vector<2x16x32xf32>, vector<16x32x4xf32>, vector<16x2x4xf32> -> vector<16x2x4xf32>
    "tpu.trace_stop"() : () -> ()
    "tpu.trace_start"() <{level = 10 : i32, message = "the,ehc->thc"}> : () -> ()
    %cst_28 = arith.constant dense<0.000000e+00> : vector<2x8x16xf32>
    %54 = tpu.matmul %6, %53, %cst_28 {dimension_numbers = #tpu.dot_dimension_numbers<[0], [2], [2], [0], [0, 1, 0, 2, 1, 0], [1], [1]>} : vector<4x2x8xf32>, vector<16x2x4xf32>, vector<2x8x16xf32> -> vector<2x8x16xf32>
    %55 = tpu.transpose %54, [2, 0, 1] : vector<2x8x16xf32> -> vector<16x2x8xf32>
    "tpu.trace_stop"() : () -> ()
    %56 = arith.addf %52, %55 : vector<16x2x8xf32>
    %57 = vector.shape_cast %56 : vector<16x2x8xf32> to vector<16x16xf32>
    %c0_29 = arith.constant 0 : index
    %c0_30 = arith.constant 0 : index
    %58 = vector.load %arg8[%c0_29, %c0_30] : memref<1x16xf32, #tpu.memory_space<vmem>>, vector<1x16xf32>
    %59 = vector.broadcast %58 : vector<1x16xf32> to vector<16x16xf32>
    %60 = arith.mulf %57, %59 : vector<16x16xf32>
    %cst_31 = arith.constant dense<0.000000e+00> : vector<16xf32>
    %61 = vector.multi_reduction <add>, %60, %cst_31 [1] : vector<16x16xf32> to vector<16xf32>
    %62 = vector.shape_cast %61 : vector<16xf32> to vector<16x1xf32>
    %c0_32 = arith.constant 0 : index
    %c0_33 = arith.constant 0 : index
    %63 = vector.load %arg9[%c0_32, %c0_33] : memref<1x16xf32, #tpu.memory_space<vmem>>, vector<1x16xf32>
    %64 = vector.broadcast %63 : vector<1x16xf32> to vector<16x16xf32>
    %65 = arith.mulf %19, %64 : vector<16x16xf32>
    %cst_34 = arith.constant dense<0.000000e+00> : vector<16xf32>
    %66 = vector.multi_reduction <add>, %65, %cst_34 [1] : vector<16x16xf32> to vector<16xf32>
    %67 = vector.shape_cast %66 : vector<16xf32> to vector<16x1xf32>
    %68 = arith.addf %62, %67 : vector<16x1xf32>
    %69 = arith.negf %68 : vector<16x1xf32>
    %70 = math.exp %69 : vector<16x1xf32>
    %cst_35 = arith.constant 1.000000e+00 : f32
    %71 = vector.broadcast %cst_35 : f32 to vector<16x1xf32>
    %72 = arith.addf %71, %70 : vector<16x1xf32>
    %73 = arith.divf %71, %72 : vector<16x1xf32>
    %74 = vector.broadcast %73 : vector<16x1xf32> to vector<16x16xf32>
    %75 = arith.mulf %74, %19 : vector<16x16xf32>
    %cst_36 = arith.constant 1.000000e+00 : f32
    %76 = vector.broadcast %cst_36 : f32 to vector<16x1xf32>
    %77 = arith.subf %76, %73 : vector<16x1xf32>
    %78 = vector.broadcast %77 : vector<16x1xf32> to vector<16x16xf32>
    %79 = arith.mulf %78, %57 : vector<16x16xf32>
    %80 = arith.addf %75, %79 : vector<16x16xf32>
    %cst_37 = arith.constant dense<0.000000e+00> : vector<16xf32>
    %81 = vector.multi_reduction <add>, %80, %cst_37 [1] : vector<16x16xf32> to vector<16xf32>
    %82 = vector.shape_cast %81 : vector<16xf32> to vector<16x1xf32>
    %cst_38 = arith.constant 1.600000e+01 : f32
    %83 = vector.broadcast %cst_38 : f32 to vector<16x1xf32>
    %84 = arith.divf %82, %83 : vector<16x1xf32>
    %85 = vector.broadcast %84 : vector<16x1xf32> to vector<16x16xf32>
    %86 = arith.subf %80, %85 : vector<16x16xf32>
    %87 = arith.mulf %86, %86 : vector<16x16xf32>
    %cst_39 = arith.constant dense<0.000000e+00> : vector<16xf32>
    %88 = vector.multi_reduction <add>, %87, %cst_39 [1] : vector<16x16xf32> to vector<16xf32>
    %89 = vector.shape_cast %88 : vector<16xf32> to vector<16x1xf32>
    %cst_40 = arith.constant 1.600000e+01 : f32
    %90 = vector.broadcast %cst_40 : f32 to vector<16x1xf32>
    %91 = arith.divf %89, %90 : vector<16x1xf32>
    %92 = vector.broadcast %84 : vector<16x1xf32> to vector<16x16xf32>
    %93 = arith.subf %80, %92 : vector<16x16xf32>
    %cst_41 = arith.constant 9.99999974E-6 : f32
    %94 = vector.broadcast %cst_41 : f32 to vector<16x1xf32>
    %95 = arith.addf %91, %94 : vector<16x1xf32>
    %96 = math.rsqrt %95 : vector<16x1xf32>
    %97 = vector.broadcast %96 : vector<16x1xf32> to vector<16x16xf32>
    %98 = arith.mulf %93, %97 : vector<16x16xf32>
    %c0_42 = arith.constant 0 : index
    %c0_43 = arith.constant 0 : index
    %99 = vector.load %arg10[%c0_42, %c0_43] : memref<1x16xf32, #tpu.memory_space<vmem>>, vector<1x16xf32>
    %100 = vector.broadcast %99 : vector<1x16xf32> to vector<16x16xf32>
    %101 = arith.mulf %98, %100 : vector<16x16xf32>
    %c0_44 = arith.constant 0 : index
    %c0_45 = arith.constant 0 : index
    %102 = vector.load %arg11[%c0_44, %c0_45] : memref<1x16xf32, #tpu.memory_space<vmem>>, vector<1x16xf32>
    %103 = vector.broadcast %102 : vector<1x16xf32> to vector<16x16xf32>
    %104 = arith.addf %101, %103 : vector<16x16xf32>
    %cst_46 = arith.constant 0.000000e+00 : f32
    %105 = vector.broadcast %cst_46 : f32 to vector<16x16xf32>
    %106 = arith.cmpf oge, %104, %105 : vector<16x16xf32>
    %cst_47 = arith.constant 0.00999999977 : f32
    %107 = vector.broadcast %cst_47 : f32 to vector<16x16xf32>
    %108 = arith.mulf %107, %104 : vector<16x16xf32>
    %109 = arith.select %106, %104, %108 : vector<16x16xi1>, vector<16x16xf32>
    %c0_48 = arith.constant 0 : index
    %c0_49 = arith.constant 0 : index
    %110 = vector.load %arg12[%c0_48, %c0_49] : memref<16x16xf32, #tpu.memory_space<vmem>>, vector<16x16xf32>
    tpu.vector_store %arg12[%c0_48, %c0_49], %109 {strides = array<i32>} : memref<16x16xf32, #tpu.memory_space<vmem>>, vector<16x16xf32>,
    return
  }
  func.func @transform_0(%arg0: i32) -> (i32, i32) {
    %c0_i32 = arith.constant 0 : i32
    %c0_i32_0 = arith.constant 0 : i32
    %c0_i32_1 = arith.constant 0 : i32
    return %c0_i32, %c0_i32_0 : i32, i32
  }
  func.func @transform_1(%arg0: i32) -> (i32, i32) {
    %c0_i32 = arith.constant 0 : i32
    %c0_i32_0 = arith.constant 0 : i32
    return %arg0, %c0_i32 : i32, i32
  }
  func.func @transform_2(%arg0: i32) -> (i32, i32) {
    %c0_i32 = arith.constant 0 : i32
    %c0_i32_0 = arith.constant 0 : i32
    return %arg0, %c0_i32 : i32, i32
  }
  func.func @transform_3(%arg0: i32) -> (i32, i32, i32) {
    %c0_i32 = arith.constant 0 : i32
    %c0_i32_0 = arith.constant 0 : i32
    %c0_i32_1 = arith.constant 0 : i32
    return %arg0, %c0_i32, %c0_i32_0 : i32, i32, i32
  }
  func.func @transform_4(%arg0: i32) -> (i32, i32) {
    %c0_i32 = arith.constant 0 : i32
    %c0_i32_0 = arith.constant 0 : i32
    %c0_i32_1 = arith.constant 0 : i32
    return %c0_i32, %c0_i32_0 : i32, i32
  }
  func.func @transform_5(%arg0: i32) -> (i32, i32) {
    %c0_i32 = arith.constant 0 : i32
    %c0_i32_0 = arith.constant 0 : i32
    %c0_i32_1 = arith.constant 0 : i32
    return %c0_i32, %c0_i32_0 : i32, i32
  }
  func.func @transform_6(%arg0: i32) -> (i32, i32, i32) {
    %c0_i32 = arith.constant 0 : i32
    %c0_i32_0 = arith.constant 0 : i32
    %c0_i32_1 = arith.constant 0 : i32
    %c0_i32_2 = arith.constant 0 : i32
    return %c0_i32, %c0_i32_0, %c0_i32_1 : i32, i32, i32
  }
  func.func @transform_7(%arg0: i32) -> (i32, i32) {
    %c0_i32 = arith.constant 0 : i32
    %c0_i32_0 = arith.constant 0 : i32
    %c0_i32_1 = arith.constant 0 : i32
    return %c0_i32, %c0_i32_0 : i32, i32
  }
  func.func @transform_8(%arg0: i32) -> (i32, i32) {
    %c0_i32 = arith.constant 0 : i32
    %c0_i32_0 = arith.constant 0 : i32
    %c0_i32_1 = arith.constant 0 : i32
    return %c0_i32, %c0_i32_0 : i32, i32
  }
  func.func @transform_9(%arg0: i32) -> (i32, i32) {
    %c0_i32 = arith.constant 0 : i32
    %c0_i32_0 = arith.constant 0 : i32
    %c0_i32_1 = arith.constant 0 : i32
    return %c0_i32, %c0_i32_0 : i32, i32
  }
  func.func @transform_10(%arg0: i32) -> (i32, i32) {
    %c0_i32 = arith.constant 0 : i32
    %c0_i32_0 = arith.constant 0 : i32
    %c0_i32_1 = arith.constant 0 : i32
    return %c0_i32, %c0_i32_0 : i32, i32
  }
  func.func @transform_11(%arg0: i32) -> (i32, i32) {
    %c0_i32 = arith.constant 0 : i32
    %c0_i32_0 = arith.constant 0 : i32
    return %arg0, %c0_i32 : i32, i32
  }
}

</mosaic_0001>

<bundles_post_ra>
// kernel: tpu_custom_call.1
= control target key start
LH: loop header
LB: loop body
LE: loop exit
PB: predicated region body
PF: predicated region fallthrough
CT: control target
= control target key end

     0   :  { %s4702_s17 = smov 0   ;;  %s5683_s0 = inlined_call_operand.vmem [shape: f32[32,8], index: 0, kind: input, shape index: {}]   ;;  %s5684_s1 = inlined_call_operand.vmem [shape: f32[32,8], index: 1, kind: input, shape index: {}]   ;;  %s5685_s2 = inlined_call_operand.vmem [shape: f32[32,32], index: 2, kind: input, shape index: {}]   ;;  %s5686_s3 = inlined_call_operand.vmem [shape: f32[32,32,4], index: 3, kind: input, shape index: {}]   ;;  %s5687_s4 = inlined_call_operand.vmem [shape: f32[8,64], index: 4, kind: input, shape index: {}]   ;;  %s5688_s5 = inlined_call_operand.vmem [shape: f32[1,64], index: 5, kind: input, shape index: {}]   ;;  %s5689_s6 = inlined_call_operand.vmem [shape: f32[4,2,8], index: 6, kind: input, shape index: {}]   ;;  %s5690_s7 = inlined_call_operand.vmem [shape: f32[1,16], index: 7, kind: input, shape index: {}]   ;;  %s5691_s8 = inlined_call_operand.vmem [shape: f32[1,16], index: 8, kind: input, shape index: {}]   ;;  %s5692_s9 = inlined_call_operand.vmem [shape: f32[1,16], index: 9, kind: input, shape index: {}]   ;;  %s5693_s10 = inlined_call_operand.vmem [shape: f32[1,16], index: 10, kind: input, shape index: {}]   ;;  %s5694_s11 = inlined_call_operand.vmem [shape: f32[32,16], index: 11, kind: output, shape index: {}]  }
   0x1 LB: > { %s4393_s18 = sadd.s32 4294967295, %s4631_s17   ;;  %p4397_p0 = scmp.ge.s32.totalorder %s4631_s17, 1  ;;  %s4631_s17 = sphi %s4702_s17, %s21_s17  }
   0x2   : > { %p361_p1 = scmp.lt.s32.totalorder %s4631_s17, 3 }
   0x4   : > { %p362_p2 = pnand %p4397_p0, %p361_p1 }
   0x6   : > { %365 = sbr.rel (%p362_p2) target bundleno = 3200 (0xc80), region = 64 }
   0xb   : > { %v509_v0 = vld [vmem:[%s5687_s4] sm:$0xff]  ;;  %s4398_s21 = sshll.u32 %s4393_s18, 1  ;;  %vm518_vm0 = vcmask 64512   ;;  %s4633_s30 = smov 120   ;;  %v438_v9 = vld [vmem:[%s5683_s0 + $0x8] sm:$0xff]  ;;  %v439_v10 = vld [vmem:[%s5683_s0 + $0x10] sm:$0xff] }
   0xc   : > { %581 = vmatpush.msra.mxu1 %v509_v0  ;;  %p413_p3 = scmp.lt.s32.totalorder %s4398_s21, 3  ;;  %546 = vmatpush.msra.mxu0 %v509_v0  ;;  %v437_v3 = vld [vmem:[%s5683_s0] sm:$0xff]  ;;  %v440_v13 = vld [vmem:[%s5683_s0 + $0x18] sm:$0xff]  ;;  %s4634_s20 = smov 96   ;;  %v4635_v27 = vmov 1983009808  }
   0xd   : > { %4407 = vmatmul.msk.f32.vlgmr.msra.gmra.mxu0 %vm518_vm0, %v437_v3  ;;  %v4590_v4 = vld [vmem:[%s5688_s5] ss:$0 sm:$0xff]  ;;  %v4766_v25 = vld [vmem:[%s5689_s6 + $0x6] sm:$0x3]  ;;  %v613_v28 = vunpack.c.l.s4 %v4635_v27  ;;  %s4636_s24 = smov 112   ;;  %vm610_vm1 = vcmask 1047556  }
   0xe   : > { %s5750_s21 = smov (!%p413_p3, %s4398_s21), 3  ;;  %v616_v29 = vrot.slane %v4766_v25, 4  ;;  %v4774_v30 = vld [vmem:[%s5689_s6 + $0x2] sm:$0x3]  ;;  %v4779_v31 = vld [vmem:[%s5689_s6 + $0x4] sm:$0x3] }
   0xf   : > { %s4715_s22 = sshll.u32 %s5750_s21, 3  ;;  %v4781_v32 = vunpack.c.0.s8 %v613_v28  ;;  %v609_v33 = vrot.slane %v4779_v31, 4  ;;  %v4789_v35 = vld [vmem:[%s5689_s6] sm:$0x3]  ;;  %v4637_v38 = vmov 1934713408  }
  0x10   : > { %s416_s25 = scalar_lea.vmem %s5684_s1, %s4715_s22  ;;  %v617_v34 = vsel %vm610_vm1, %v616_v29, %v4774_v30  ;;  %v625_v39 = vunpack.c.l.s4 %v4637_v38  ;;  %s4402_s12 = sshll.u32 %s4393_s18, 4  ;;  %vm908_vm2 = vcmask 31744   ;;  %vm1705_vm4 = vcmask 261120  }
  0x11   : > { %v441_v1 = vld [vmem:[%s416_s25] sm:$0xff]  ;;  %v442_v2 = vld [vmem:[%s416_s25 + $0x8] sm:$0xff]  ;;  %v621_v36 = vperm.slane %v617_v34, %v4781_v32  ;;  %v611_v37 = vsel %vm610_vm1, %v609_v33, %v4789_v35  ;;  %p425_p4 = scmp.lt.s32.totalorder %s4402_s12, 31  ;;  %s422_s21 = scalar_lea.vmem %s5685_s2, %s4715_s22  ;;  %vm3799_vm6 = vcmask 1043456   ;;  %vm4129_vm7 = vcmask 130048  }
  0x12   : > { %4411 = vmatmul.msk.f32.vlgmr.msra.gmra.mxu1 %vm518_vm0, %v441_v1  ;;  %v615_v40 = vperm.slane %v611_v37, %v4781_v32  ;;  %v4796_v42 = vunpack.c.0.s8 %v625_v39  ;;  %s4639_s25 = smov 80   ;;  %s4640_s26 = smov 8  }
  0x13   : > { %v622_v41 = vrot.slane %v621_v36, 4  ;;  %s5752_s12 = smov (!%p425_p4, %s4402_s12), 31 }
  0x14   : > { %s4529_s13 = sshll.u32 %s5752_s12, 5 }
  0x15   : > { %4408 = vmatmul.msk.f32.gmra.mxu0 %vm518_vm0, %v438_v9  ;;  %v623_v43 = vsel %vm610_vm1, %v622_v41, %v615_v40  ;;  %s4819_s16 = scalar_lea.vmem %s5686_s3, %s4529_s13 }
  0x16   : > { %v627_v44 = vperm.slane %v623_v43, %v4796_v42  ;;  %v4822_v59 = vld [vmem:[%s4819_s16 + $0x58] sm:$0xff]  ;;  %v4838_v63 = vld [vmem:[%s4819_s16 + $0x50] sm:$0xff]  ;;  %v4869_v9 = vld [vmem:[%s4819_s16 + $0x68] sm:$0xff] }
  0x17   : > { %v4825_v60 = vld [vmem:[%s4819_s16 + $0x38] sm:$0xff]  ;;  %v4841_v0 = vld [vmem:[%s4819_s16 + $0x30] sm:$0xff]  ;;  %5715 = vst [vmem:[#allocation4_spill] sm:$0xff] %v4869_v9  ;;  %v4959_v28 = vld [vmem:[%s4819_s16 + $0xc0] sm:$0xff] }
  0x18   : > { %v628_v45 = vrot.slane %v627_v44, 4  ;;  %v4832_v61 = vld [vmem:[%s4819_s16 + $0x78] sm:$0xff]  ;;  %v4848_v1 = vld [vmem:[%s4819_s16 + $0x70] sm:$0xff]  ;;  %v4964_v29 = vld [vmem:[%s4819_s16 + $0xa0] sm:$0xff] }
  0x19   : > { %5713 = vst [vmem:[#allocation2_spill] sm:$0xff] %v4832_v61  ;;  %v4835_v62 = vld [vmem:[%s4819_s16 + $0x18] sm:$0xff]  ;;  %4430 = vmatpush.xpose.msk.msrb.mxu0 %vm908_vm2, %v4832_v61  ;;  %v4953_v27 = vld [vmem:[%s4819_s16 + $0x90] sm:$0xff]  ;;  %v4967_v33 = vld [vmem:[%s4819_s16 + $0xe8] sm:$0xff] }
  0x1a   : > { %4412 = vmatmul.msk.f32.gmra.mxu1 %vm518_vm0, %v442_v2  ;;  %v629_v47 = vsel %vm610_vm1, 0.0, %v628_v45  ;;  %5714 = vst [vmem:[#allocation3_spill] sm:$0xff] %v4848_v1  ;;  %v4851_v2 = vld [vmem:[%s4819_s16 + $0x10] sm:$0xff]  ;;  %v4974_v34 = vld [vmem:[%s4819_s16 + $0x88] sm:$0xff]  ;;  %v4979_v36 = vld [vmem:[%s4819_s16 + $0xe0] sm:$0xff] }
  0x1b   : > { %4415 = vmatpush.xpose.msk.msrb.mxu1 %vm908_vm2, %v4835_v62  ;;  %5719 = vst [vmem:[#allocation8_spill] sm:$0xff] %v4967_v33  ;;  %v4984_v37 = vld [vmem:[%s4819_s16 + $0x80] sm:$0xff] }
  0x1c   : > { %5720 = vst [vmem:[#allocation9_spill] sm:$0xff] %v4979_v36 }
  0x1d   : > { %4409 = vmatmul.msk.f32.gmra.mxu0 %vm518_vm0, %v439_v10  ;;  %v4872_v10 = vld [vmem:[%s4819_s16 + $0x8] sm:$0xff] }
  0x1e   : > { %4431 = vmatpush.xpose.msk.msrb.mxu0 %vm908_vm2, %v4848_v1 }
  0x1f   : > { %4416 = vmatpush.xpose.msk.msrb.mxu1 %vm908_vm2, %v4851_v2 }
  0x22   : > { %4432 = vmatpush.xpose.msk.msrb.mxu0 %vm908_vm2, %v4869_v9  ;;  %v5125_v9 = vld [vmem:[%s4819_s16 + $0x190] sm:$0xff] }
  0x23   : > { %4417 = vmatpush.xpose.msk.msrb.mxu1 %vm908_vm2, %v4872_v10 }
  0x25   : > { %4410 = vmatmul.msk.f32.gmra.mxu0 %vm518_vm0, %v440_v13  ;;  %v4890_v13 = vld [vmem:[%s4819_s16 + $0xd8] sm:$0xff] }
  0x8a   : > { %v548_v11 = vpop.f32.mrf.mxu0 }
  0x8b   : > { %v549_v12 = vadd.f32 %v4590_v4, %v548_v11  ;;  %v4880_v11 = vld [vmem:[%s4819_s16 + $0x40] sm:$0xff] }
  0x8d   : > { %601 = vrot.lane.b32.xlu2 %v549_v12, %s4633_s30 }
  0x8f   : > { %v583_v5 = vpop.f32.mrf.mxu1 }
  0x90   : > { %v4730_v6 = vadd.f32 %v4590_v4, %v583_v5  ;;  %v4859_v5 = vld [vmem:[%s4819_s16 + $0x48] sm:$0xff] }
  0x92   : > { %591 = vrot.lane.b32.xlu0 %v4730_v6, %s4633_s30  ;;  %v551_v18 = vpop.f32.mrf.mxu0 }
  0x93   : > { %v4756_v19 = vadd.f32 %v4590_v4, %v551_v18  ;;  %v4909_v18 = vld [vmem:[%s4819_s16 + $0xd0] sm:$0xff] }
  0x95   : > { %603 = vrot.lane.b32.xlu2 %v4756_v19, %s4633_s30 }
  0x97   : > { %v586_v7 = vpop.f32.mrf.mxu1 }
  0x98   : > { %v4733_v8 = vadd.f32 %v4590_v4, %v586_v7  ;;  %v4862_v7 = vld [vmem:[%s4819_s16 + $0x28] sm:$0xff] }
  0x9a   : > { %593 = vrot.lane.b32.xlu0 %v4733_v8, %s4633_s30  ;;  %v554_v20 = vpop.f32.mrf.mxu0 }
  0x9b   : > { %v555_v21 = vadd.f32 %v4590_v4, %v554_v20  ;;  %v4912_v20 = vld [vmem:[%s4819_s16] sm:$0xff] }
  0x9c   : > { %4418 = vmatpush.xpose.msk.msrb.mxu1 %vm908_vm2, %v4912_v20 }
  0xa2   : > { %605 = vrot.lane.b32.xlu0 %v555_v21, %s4633_s30  ;;  %v557_v22 = vpop.f32.mrf.mxu0 }
  0xa3   : > { %v4759_v23 = vadd.f32 %v4590_v4, %v557_v22  ;;  %v4922_v22 = vld [vmem:[%s4819_s16 + $0xf8] sm:$0xff] }
  0xa4   : > { %5717 = vst [vmem:[#allocation6_spill] sm:$0xff] %v4922_v22 }
  0xe7   : > { %v602_v24 = vpop.permute.xlu2 %601 }
  0xe8   : > { %v4557_v26 = vpack.i.bf16 %v602_v24, %v549_v12 }
  0xea   : > { %4558 = vrot.lane.b32.xlu2 %v4557_v26, %s4636_s24  ;;  %v4946_v26 = vld [vmem:[%s4819_s16 + $0xf0] sm:$0xff] }
  0xeb   : > { %5718 = vst [vmem:[#allocation7_spill] sm:$0xff] %v4946_v26 }
  0xef   : > { %v4805_v50 = vpop.permute.xlu2 %603 }
  0xf0   : > { %v4562_v51 = vpack.i.bf16 %v4805_v50, %v4756_v19 }
  0xf2   : > { %4563 = vrot.lane.b32.xlu0 %v4562_v51, %s4636_s24 }
 0x104   : > { %v4748_v14 = vpop.permute.xlu0 %591 }
 0x105   : > { %v4548_v15 = vpack.i.bf16 %v4730_v6, %v4748_v14 }
 0x107   : > { %4549 = vxpose.xlu1.b32.start [1/2] (short) (narrow) %v4548_v15, 8  ;;  %v4893_v15 = vld [vmem:[%s4819_s16 + $0xb8] sm:$0xff] }
 0x10c   : > { %v4752_v16 = vpop.permute.xlu0 %593 }
 0x10d   : > { %v4550_v17 = vpack.i.bf16 %v4733_v8, %v4752_v16 }
 0x10f   : > { %4551 = vxpose.xlu1.b32.end [2/2] (short) (narrow) %v4550_v17, 8  ;;  %v4906_v17 = vld [vmem:[%s4819_s16 + $0x60] sm:$0xff] }
 0x110   : > { %5716 = vst [vmem:[#allocation5_spill] sm:$0xff] %v4906_v17  ;;  %4433 = vmatpush.xpose.msk.msrb.mxu0 %vm908_vm2, %v4906_v17  ;;  %v5122_v17 = vld [vmem:[%s4819_s16 + $0x1d0] sm:$0xff] }
 0x114   : > { %v4810_v52 = vpop.permute.xlu0 %605  ;;  %4450 = vmatpush.xpose.msk.msra.mxu0 %vm908_vm2, %v4922_v22 }
 0x115   : > { %v4567_v53 = vpack.i.bf16 %v4810_v52, %v555_v21 }
 0x117   : > { %4568 = vrot.lane.b32.xlu0 %v4567_v53, %s4636_s24 }
 0x118   : > { %4451 = vmatpush.xpose.msk.msra.mxu0 %vm908_vm2, %v4946_v26 }
 0x11c   : > { %4452 = vmatpush.xpose.msk.msra.mxu0 %vm908_vm2, %v4967_v33  ;;  %v5060_v33 = vld [vmem:[%s4819_s16 + $0x128] sm:$0xff] }
 0x120   : > { %4453 = vmatpush.xpose.msk.msra.mxu0 %vm908_vm2, %v4979_v36 }
 0x144   : > { %v4559_v56 = vpop.permute.xlu2 %4558 }
 0x164   : > { %v4564_v57 = vpop.permute.xlu0 %4563 }
 0x169   : > { %607 = vrot.lane.b32.xlu1 %v4759_v23, %s4633_s30 }
 0x171   : > { %1758 = vrot.lane.b32.xlu1 %v549_v12, %s4634_s20  ;;  %v4883_v12 = vld [vmem:[%s4819_s16 + $0x20] sm:$0xff] }
 0x179   : > { %1762 = vrot.lane.b32.xlu1 %v555_v21, %s4634_s20  ;;  %v4919_v21 = vld [vmem:[%s4819_s16 + $0xb0] sm:$0xff] }
 0x181   : > { %1766 = vrot.lane.b32.xlu1 %v602_v24, %s4634_s20  ;;  %v4943_v24 = vld [vmem:[%s4819_s16 + $0xa8] sm:$0xff] }
 0x189   : > { %1764 = vrot.lane.b32.xlu1 %v4759_v23, %s4634_s20  ;;  %v4569_v58 = vpop.permute.xlu0 %4568 }
 0x1ab   : > { %v4552_v46 = vpop.trf.xlu1 }
 0x1ac   : > { %v4556_v48 = vunpack.i.h.bf16 %v4552_v46  ;;  %v4553_v49 = vunpack.i.l.bf16 %v4552_v46 }
 0x1ae   : > { %712 = vmatpush.msra.mxu2 %v4556_v48  ;;  %735 = vmatpush.msra.mxu3 %v4553_v49 }
 0x1af   : > { %4413 = vmatmul.msk.f32.vlgmr.msra.gmra.mxu2 %vm518_vm0, %v627_v44  ;;  %4414 = vmatmul.msk.f32.vlgmr.msra.gmra.mxu3 %vm518_vm0, %v629_v47 }
 0x1b0   : > { %4425 = vmatpush.xpose.msk.msrb.mxu3 %vm908_vm2, %v4822_v59  ;;  %4420 = vmatpush.xpose.msk.msrb.mxu2 %vm908_vm2, %v4825_v60 }
 0x1b4   : > { %4426 = vmatpush.xpose.msk.msrb.mxu3 %vm908_vm2, %v4838_v63  ;;  %4421 = vmatpush.xpose.msk.msrb.mxu2 %vm908_vm2, %v4841_v0 }
 0x1b8   : > { %4427 = vmatpush.xpose.msk.msrb.mxu3 %vm908_vm2, %v4859_v5  ;;  %4422 = vmatpush.xpose.msk.msrb.mxu2 %vm908_vm2, %v4862_v7 }
 0x1bc   : > { %4428 = vmatpush.xpose.msk.msrb.mxu3 %vm908_vm2, %v4880_v11  ;;  %4423 = vmatpush.xpose.msk.msrb.mxu2 %vm908_vm2, %v4883_v12 }
 0x1c0   : > { %4445 = vmatpush.xpose.msk.msra.mxu3 %vm908_vm2, %v4890_v13  ;;  %4440 = vmatpush.xpose.msk.msra.mxu2 %vm908_vm2, %v4893_v15 }
 0x1c4   : > { %4446 = vmatpush.xpose.msk.msra.mxu3 %vm908_vm2, %v4909_v18  ;;  %4441 = vmatpush.xpose.msk.msra.mxu2 %vm908_vm2, %v4919_v21 }
 0x1c8   : > { %4442 = vmatpush.xpose.msk.msra.mxu2 %vm908_vm2, %v4943_v24 }
 0x1cc   : > { %4443 = vmatpush.xpose.msk.msra.mxu2 %vm908_vm2, %v4964_v29 }
 0x1db   : > { %v608_v3 = vpop.permute.xlu1 %607 }
 0x1dc   : > { %v4572_v4 = vpack.i.bf16 %v608_v3, %v4759_v23  ;;  %v4938_v23 = vld [vmem:[%s4819_s16 + $0xc8] sm:$0xff] }
 0x1dd   : > { %4447 = vmatpush.xpose.msk.msra.mxu3 %vm908_vm2, %v4938_v23 }
 0x1e1   : > { %4448 = vmatpush.xpose.msk.msra.mxu3 %vm908_vm2, %v4959_v28 }
 0x232   : > { %v714_v54 = vpop.f32.mrf.mxu2  ;;  %v737_v55 = vpop.f32.mrf.mxu3 }
 0x233   : > { %740 = vxpose.xlu0.b32.start.end [1/1] (short) (narrow) %v714_v54, 16  ;;  %772 = vxpose.xlu2.b32.start.end [1/1] (short) (narrow) %v737_v55, 16 }
 0x243   : > { %4578 = vxpose.xlu0.b32.start [1/4] (short) (narrow) %v4559_v56, 8 }
 0x24b   : > { %4580 = vxpose.xlu0.b32.cont [2/4] (short) (narrow) %v4564_v57, 8  ;;  %v4998_v57 = vld [vmem:[%s4819_s16 + $0x118] sm:$0xff] }
 0x253   : > { %4582 = vxpose.xlu0.b32.cont [3/4] (short) (narrow) %v4569_v58, 8 }
 0x2a4   : > { %4573 = vrot.lane.b32.xlu2 %v4572_v4, %s4636_s24  ;;  %s4638_s24 = smov 48  }
 0x2ac   : > { %1760 = vrot.lane.b32.xlu2 %v4756_v19, %s4634_s20  ;;  %v4933_v19 = vld [vmem:[%s4819_s16 + $0x98] sm:$0xff] }
 0x2ad   : > { %4435 = vmatpush.xpose.msk.msra.mxu1 %vm908_vm2, %v4933_v19 }
 0x2b1   : > { %4436 = vmatpush.xpose.msk.msra.mxu1 %vm908_vm2, %v4953_v27 }
 0x2b4   : > { %1768 = vrot.lane.b32.xlu2 %v4805_v50, %s4634_s20 }
 0x2b5   : > { %4437 = vmatpush.xpose.msk.msra.mxu1 %vm908_vm2, %v4974_v34 }
 0x2b9   : > { %4438 = vmatpush.xpose.msk.msra.mxu1 %vm908_vm2, %v4984_v37 }
 0x2bc   : > { %1772 = vrot.lane.b32.xlu2 %v608_v3, %s4634_s20 }
 0x2cc   : > { %v788_v38 = vpop.trf.xlu2 }
 0x2cd   : > { %v814_v39 = vrot.slane %v788_v38, 4  ;;  %v819_v41 = vperm.slane %v788_v38, %v4781_v32 }
 0x2cf   : > { %v815_v40 = vsel %vm610_vm1, 0.0, %v814_v39  ;;  %v824_v44 = vrot.slane %v819_v41, 4  ;;  %v5004_v39 = vld [vmem:[%s4819_s16 + $0x158] sm:$0xff] }
 0x2d0   : > { %v823_v43 = vperm.slane %v815_v40, %v4781_v32 }
 0x2d2   : > { %v836_v49 = vrot.slane %v823_v43, 4 }
 0x2d4   : > { %v789_v46 = vpop.trf.xlu2 }
 0x2d5   : > { %v871_v54 = vperm.slane %v789_v46, %v4781_v32 }
 0x2d7   : > { %v756_v45 = vpop.trf.xlu0 }
 0x2d8   : > { %v804_v47 = vrot.slane %v756_v45, 4  ;;  %v809_v48 = vperm.slane %v756_v45, %v4781_v32  ;;  %v876_v45 = vrot.slane %v871_v54, 4 }
 0x2da   : > { %v805_v50 = vsel %vm610_vm1, 0.0, %v804_v47  ;;  %v825_v51 = vsel %vm610_vm1, %v824_v44, %v809_v48  ;;  %v826_v53 = vrot.slane %v809_v48, 4  ;;  %v5008_v44 = vld [vmem:[%s4819_s16 + $0x138] sm:$0xff] }
 0x2db   : > { %v813_v55 = vperm.slane %v805_v50, %v4781_v32  ;;  %v831_v56 = vperm.slane %v825_v51, %v4796_v42  ;;  %v5017_v50 = vld [vmem:[%s4819_s16 + $0x110] sm:$0xff] }
 0x2dc   : > { %v827_v58 = vsel %vm610_vm1, %v819_v41, %v826_v53  ;;  %v5023_v53 = vld [vmem:[%s4819_s16 + $0x178] sm:$0xff] }
 0x2dd   : > { %v837_v3 = vsel %vm610_vm1, %v836_v49, %v813_v55  ;;  %v838_v4 = vrot.slane %v813_v55, 4  ;;  %v835_v38 = vperm.slane %v827_v58, %v4796_v42  ;;  %v848_v40 = vrot.slane %v831_v56, 4  ;;  %4419 = vmatmul.msk.f32.vlgmr.msrb.gmra.mxu1 %vm908_vm2, %v831_v56  ;;  %5721 = vst [vmem:[#allocation10_spill] sm:$0xff] %v5023_v53  ;;  %v5029_v56 = vld [vmem:[%s4819_s16 + $0x150] sm:$0xff] }
 0x2de   : > { %4455 = vmatpush.xpose.msk.msrb.mxu1 %vm908_vm2, %v4998_v57  ;;  %v843_v41 = vperm.slane %v837_v3, %v4796_v42  ;;  %v866_v55 = vrot.slane %v789_v46, 4 }
 0x2df   : > { %v839_v47 = vsel %vm610_vm1, %v823_v43, %v838_v4  ;;  %4429 = vmatmul.msk.f32.vlgmr.msrb.gmra.mxu3 %vm908_vm2, %v835_v38  ;;  %v849_v48 = vsel %vm610_vm1, 0.0, %v848_v40  ;;  %v850_v49 = vrot.slane %v835_v38, 4  ;;  %v757_v51 = vpop.trf.xlu0  ;;  %v5035_v38 = vld [vmem:[%s4819_s16 + $0x130] sm:$0xff] }
 0x2e0   : > { %4465 = vmatpush.xpose.msk.msrb.mxu3 %vm908_vm2, %v5004_v39  ;;  %4424 = vmatmul.msk.f32.vlgmr.msrb.gmra.mxu2 %vm908_vm2, %v849_v48  ;;  %v861_v43 = vperm.slane %v757_v51, %v4781_v32  ;;  %v847_v3 = vperm.slane %v839_v47, %v4796_v42  ;;  %v852_v4 = vrot.slane %v843_v41, 4  ;;  %v5043_v48 = vld [vmem:[%s4819_s16 + $0x108] sm:$0xff]  ;;  %v5048_v47 = vld [vmem:[%s4819_s16 + $0x170] sm:$0xff]  ;;  %v856_v36 = vrot.slane %v757_v51, 4 }
 0x2e1   : > { %4460 = vmatpush.xpose.msk.msrb.mxu2 %vm908_vm2, %v5008_v44  ;;  %v851_v58 = vsel %vm610_vm1, 0.0, %v850_v49  ;;  %5722 = vst [vmem:[#allocation11_spill] sm:$0xff] %v5048_v47 }
 0x2e2   : > { %4434 = vmatmul.msk.f32.vlgmr.msrb.gmra.mxu0 %vm908_vm2, %v851_v58  ;;  %4456 = vmatpush.xpose.msk.msrb.mxu1 %vm908_vm2, %v5017_v50  ;;  %v877_v46 = vsel %vm610_vm1, %v876_v45, %v861_v43  ;;  %v878_v40 = vrot.slane %v861_v43, 4  ;;  %v854_v49 = vrot.slane %v847_v3, 4  ;;  %v867_v58 = vsel %vm610_vm1, 0.0, %v866_v55  ;;  %v5054_v45 = vld [vmem:[%s4819_s16 + $0x148] sm:$0xff] }
 0x2e3   : > { %4470 = vmatpush.xpose.msk.msrb.mxu0 %vm908_vm2, %v5023_v53  ;;  %v883_v43 = vperm.slane %v877_v46, %v4796_v42  ;;  %v853_v53 = vsel %vm610_vm1, 0.0, %v852_v4  ;;  %v875_v51 = vperm.slane %v867_v58, %v4781_v32  ;;  %v5078_v4 = vld [vmem:[%s4819_s16 + $0x168] sm:$0xff]  ;;  %v5081_v46 = vld [vmem:[%s4819_s16 + $0x198] sm:$0xff]  ;;  %v5090_v58 = vld [vmem:[%s4819_s16 + $0x120] sm:$0xff] }
 0x2e4   : > { %4466 = vmatpush.xpose.msk.msrb.mxu3 %vm908_vm2, %v5029_v56  ;;  %v879_v26 = vsel %vm610_vm1, %v871_v54, %v878_v40  ;;  %v855_v55 = vsel %vm610_vm1, 0.0, %v854_v49  ;;  %v857_v54 = vsel %vm610_vm1, 0.0, %v856_v36  ;;  %5723 = vst [vmem:[#allocation12_spill] sm:$0xff] %v5078_v4  ;;  %v5087_v40 = vld [vmem:[%s4819_s16 + $0x140] sm:$0xff] }
 0x2e5   : > { %4461 = vmatpush.xpose.msk.msrb.mxu2 %vm908_vm2, %v5035_v38  ;;  %4439 = vmatmul.msk.f32.vlgmr.msra.gmra.mxu1 %vm908_vm2, %v843_v41  ;;  %v5071_v41 = vld [vmem:[%s4819_s16 + $0x100] sm:$0xff]  ;;  %v900_v49 = vrot.slane %v883_v43, 4  ;;  %5724 = vst [vmem:[#allocation13_spill] sm:$0xff] %v5090_v58  ;;  %v888_v36 = vrot.slane %v875_v51, 4 }
 0x2e6   : > { %4457 = vmatpush.xpose.msk.msrb.mxu1 %vm908_vm2, %v5043_v48 }
 0x2e7   : > { %4471 = vmatpush.xpose.msk.msrb.mxu0 %vm908_vm2, %v5048_v47  ;;  %4449 = vmatmul.msk.f32.vlgmr.msra.gmra.mxu3 %vm908_vm2, %v847_v3  ;;  %v887_v3 = vperm.slane %v879_v26, %v4796_v42  ;;  %v5093_v47 = vld [vmem:[%s4819_s16 + $0x1d8] sm:$0xff] }
 0x2e8   : > { %4467 = vmatpush.xpose.msk.msrb.mxu3 %vm908_vm2, %v5054_v45  ;;  %4444 = vmatmul.msk.f32.vlgmr.msra.gmra.mxu2 %vm908_vm2, %v853_v53  ;;  %v865_v53 = vperm.slane %v857_v54, %v4781_v32  ;;  %v5102_v26 = vld [vmem:[%s4819_s16 + $0x1b8] sm:$0xff] }
 0x2e9   : > { %4462 = vmatpush.xpose.msk.msrb.mxu2 %vm908_vm2, %v5060_v33  ;;  %v902_v22 = vrot.slane %v887_v3, 4  ;;  %v5116_v54 = vld [vmem:[%s4819_s16 + $0x1f8] sm:$0xff] }
 0x2ea   : > { %4454 = vmatmul.msk.f32.vlgmr.msra.gmra.mxu0 %vm908_vm2, %v855_v55  ;;  %4458 = vmatpush.xpose.msk.msrb.mxu1 %vm908_vm2, %v5071_v41  ;;  %v5109_v55 = vld [vmem:[%s4819_s16 + $0x160] sm:$0xff]  ;;  %5726 = vst [vmem:[#allocation15_spill] sm:$0xff] %v5116_v54  ;;  %v889_v1 = vsel %vm610_vm1, %v888_v36, %v865_v53  ;;  %v890_v61 = vrot.slane %v865_v53, 4  ;;  %v5158_v53 = vld [vmem:[%s4819_s16 + $0x1a8] sm:$0xff] }
 0x2eb   : > { %4472 = vmatpush.xpose.msk.msrb.mxu0 %vm908_vm2, %v5078_v4  ;;  %5725 = vst [vmem:[#allocation14_spill] sm:$0xff] %v5109_v55  ;;  %v901_v4 = vsel %vm610_vm1, 0.0, %v900_v49  ;;  %v903_v49 = vsel %vm610_vm1, 0.0, %v902_v22  ;;  %v5149_v22 = vld [vmem:[%s4819_s16 + $0x1c8] sm:$0xff] }
 0x2ec   : > { %4468 = vmatpush.xpose.msk.msrb.mxu3 %vm908_vm2, %v5087_v40  ;;  %v891_v36 = vsel %vm610_vm1, %v875_v51, %v890_v61  ;;  %5729 = vst [vmem:[#allocation18_spill] sm:$0xff] %v5158_v53 }
 0x2ed   : > { %4463 = vmatpush.xpose.msk.msrb.mxu2 %vm908_vm2, %v5090_v58  ;;  %4459 = vmatmul.msk.f32.vlgmr.msrb.gmra.mxu1 %vm908_vm2, %v883_v43  ;;  %v5132_v58 = vld [vmem:[%s4819_s16 + $0x1b0] sm:$0xff]  ;;  %v899_v61 = vperm.slane %v891_v36, %v4796_v42 }
 0x2ee   : > { %4475 = vmatpush.xpose.msk.msra.mxu1 %vm908_vm2, %v5081_v46  ;;  %5727 = vst [vmem:[#allocation16_spill] sm:$0xff] %v5132_v58  ;;  %v5142_v43 = vld [vmem:[%s4819_s16 + $0x1f0] sm:$0xff] }
 0x2ef   : > { %4473 = vmatpush.xpose.msk.msrb.mxu0 %vm908_vm2, %v5109_v55  ;;  %4469 = vmatmul.msk.f32.vlgmr.msrb.gmra.mxu3 %vm908_vm2, %v887_v3  ;;  %5728 = vst [vmem:[#allocation17_spill] sm:$0xff] %v5142_v43  ;;  %v5153_v3 = vld [vmem:[%s4819_s16 + $0x188] sm:$0xff]  ;;  %v5179_v55 = vld [vmem:[%s4819_s16 + $0x1a0] sm:$0xff] }
 0x2f0   : > { %4485 = vmatpush.xpose.msk.msra.mxu3 %vm908_vm2, %v5093_v47  ;;  %4464 = vmatmul.msk.f32.vlgmr.msrb.gmra.mxu2 %vm908_vm2, %v901_v4  ;;  %v895_v4 = vperm.slane %v889_v1, %v4796_v42  ;;  %v5172_v1 = vld [vmem:[%s4819_s16 + $0x1c0] sm:$0xff] }
 0x2f1   : > { %4480 = vmatpush.xpose.msk.msra.mxu2 %vm908_vm2, %v5102_v26 }
 0x2f2   : > { %4476 = vmatpush.xpose.msk.msra.mxu1 %vm908_vm2, %v5125_v9  ;;  %4474 = vmatmul.msk.f32.vlgmr.msrb.gmra.mxu0 %vm908_vm2, %v903_v49  ;;  %v904_v51 = vrot.slane %v895_v4, 4  ;;  %v5176_v49 = vld [vmem:[%s4819_s16 + $0x180] sm:$0xff] }
 0x2f3   : > { %4490 = vmatpush.xpose.msk.msra.mxu0 %vm908_vm2, %v5116_v54  ;;  %v5165_v54 = vld [vmem:[%s4819_s16 + $0x1e8] sm:$0xff] }
 0x2f4   : > { %4486 = vmatpush.xpose.msk.msra.mxu3 %vm908_vm2, %v5122_v17  ;;  %5730 = vst [vmem:[#allocation19_spill] sm:$0xff] %v5165_v54  ;;  %v905_v36 = vsel %vm610_vm1, 0.0, %v904_v51 }
 0x2f5   : > { %4481 = vmatpush.xpose.msk.msra.mxu2 %vm908_vm2, %v5132_v58  ;;  %v5186_v58 = vld [vmem:[%s4819_s16 + $0x1e0] sm:$0xff]  ;;  %s435_s16 = scalar_lea.vmem %s5694_s11, %s4715_s22 }
 0x2f6   : > { %4477 = vmatpush.xpose.msk.msra.mxu1 %vm908_vm2, %v5153_v3 }
 0x2f7   : > { %4491 = vmatpush.xpose.msk.msra.mxu0 %vm908_vm2, %v5142_v43  ;;  %v906_v43 = vrot.slane %v899_v61, 4 }
 0x2f8   : > { %4487 = vmatpush.xpose.msk.msra.mxu3 %vm908_vm2, %v5149_v22 }
 0x2f9   : > { %4482 = vmatpush.xpose.msk.msra.mxu2 %vm908_vm2, %v5158_v53 }
 0x2fa   : > { %4478 = vmatpush.xpose.msk.msra.mxu1 %vm908_vm2, %v5176_v49 }
 0x2fb   : > { %4492 = vmatpush.xpose.msk.msra.mxu0 %vm908_vm2, %v5165_v54  ;;  %v907_v54 = vsel %vm610_vm1, 0.0, %v906_v43 }
 0x2fc   : > { %4488 = vmatpush.xpose.msk.msra.mxu3 %vm908_vm2, %v5172_v1 }
 0x2fd   : > { %4483 = vmatpush.xpose.msk.msra.mxu2 %vm908_vm2, %v5179_v55  ;;  %4479 = vmatmul.msk.f32.vlgmr.msra.gmra.mxu1 %vm908_vm2, %v895_v4 }
 0x2fe   : > { %v4574_v53 = vpop.permute.xlu2 %4573 }
 0x2ff   : > { %4489 = vmatmul.msk.f32.vlgmr.msra.gmra.mxu3 %vm908_vm2, %v899_v61  ;;  %4493 = vmatpush.xpose.msk.msra.mxu0 %vm908_vm2, %v5186_v58 }
 0x300   : > { %4484 = vmatmul.msk.f32.vlgmr.msra.gmra.mxu2 %vm908_vm2, %v905_v36  ;;  %4584 = vxpose.xlu0.b32.end [4/4] (short) (narrow) %v4574_v53, 8 }
 0x302   : > { %4494 = vmatmul.msk.f32.vlgmr.msra.gmra.mxu0 %vm908_vm2, %v907_v54 }
 0x303   : > { %2191 = vmatpush.msrb.mxu0 %v4835_v62 }
 0x305   : > { %2192 = vmatpush.msrb.mxu0 %v4851_v2 }
 0x307   : > { %2193 = vmatpush.msrb.mxu0 %v4872_v10 }
 0x309   : > { %2194 = vmatpush.msrb.mxu0 %v4912_v20 }
 0x30b   : > { %2283 = vmatpush.msra.mxu0 %v4933_v19 }
 0x30d   : > { %2284 = vmatpush.msra.mxu0 %v4953_v27 }
 0x30f   : > { %2285 = vmatpush.msra.mxu0 %v4974_v34 }
 0x311   : > { %2286 = vmatpush.msra.mxu0 %v4984_v37 }
 0x38c   : > { %v4585_v43 = vpop.trf.xlu0 }
 0x38d   : > { %v4589_v4 = vunpack.i.h.bf16 %v4585_v43  ;;  %v4586_v62 = vunpack.i.l.bf16 %v4585_v43 }
 0x38f   : > { %1656 = vmatpush.msrb.mxu1 %v4586_v62  ;;  %1683 = vmatpush.msrb.mxu2 %v4589_v4 }
 0x390   : > { %4495 = vmatmul.msk.f32.vlgmr.msrb.gmra.mxu1 %vm518_vm0, %v4730_v6  ;;  %4497 = vmatmul.msk.f32.vlgmr.msrb.gmra.mxu2 %vm518_vm0, %v4748_v14  ;;  %v1046_v14 = vpop.f32.mrf.mxu0 }
 0x391   : > { %2237 = vmatpush.msra.mxu2 %v4822_v59  ;;  %2214 = vmatpush.msra.mxu1 %v4825_v60  ;;  %v1011_v59 = vpop.f32.mrf.mxu3  ;;  %v976_v60 = vpop.f32.mrf.mxu2 }
 0x393   : > { %2238 = vmatpush.msra.mxu2 %v4838_v63  ;;  %2215 = vmatpush.msra.mxu1 %v4841_v0 }
 0x395   : > { %2239 = vmatpush.msra.mxu2 %v4859_v5  ;;  %2216 = vmatpush.msra.mxu1 %v4862_v7 }
 0x397   : > { %2240 = vmatpush.msra.mxu2 %v4880_v11  ;;  %2217 = vmatpush.msra.mxu1 %v4883_v12 }
 0x398   : > { %4496 = vmatmul.msk.f32.gmra.mxu1 %vm518_vm0, %v4733_v8  ;;  %4498 = vmatmul.msk.f32.gmra.mxu2 %vm518_vm0, %v4752_v16  ;;  %v941_v16 = vpop.f32.mrf.mxu1  ;;  %v1186_v63 = vpop.f32.mrf.mxu0 }
 0x399   : > { %2329 = vmatpush.msrb.mxu2 %v4890_v13  ;;  %2306 = vmatpush.msrb.mxu1 %v4893_v15  ;;  %v1151_v0 = vpop.f32.mrf.mxu3  ;;  %v1116_v2 = vpop.f32.mrf.mxu2  ;;  %v1487_v12 = vrot.slane %v1186_v63, 4  ;;  %v1475_v13 = vrot.slane %v1046_v14, 4 }
 0x39a   : > { %v1481_v15 = vrot.slane %v1151_v0, 4 }
 0x39b   : > { %2330 = vmatpush.msrb.mxu2 %v4909_v18  ;;  %2307 = vmatpush.msrb.mxu1 %v4919_v21  ;;  %v1488_v18 = vsel %vm610_vm1, %v1487_v12, %v1116_v2 }
 0x39c   : > { %v1492_v19 = vperm.slane %v1488_v18, %v4781_v32 }
 0x39d   : > { %2331 = vmatpush.msrb.mxu2 %v4938_v23  ;;  %2308 = vmatpush.msrb.mxu1 %v4943_v24  ;;  %v1469_v23 = vrot.slane %v1011_v59, 4  ;;  %v1476_v24 = vsel %vm610_vm1, %v1475_v13, %v976_v60 }
 0x39e   : > { %v1480_v37 = vperm.slane %v1476_v24, %v4781_v32  ;;  %v1499_v53 = vrot.slane %v1492_v19, 4 }
 0x39f   : > { %2332 = vmatpush.msrb.mxu2 %v4959_v28  ;;  %2309 = vmatpush.msrb.mxu1 %v4964_v29  ;;  %v1470_v61 = vsel %vm610_vm1, %v1469_v23, %v941_v16  ;;  %v5257_v23 = vld [vmem:[%s422_s21] sm:$0xff] }
 0x3a0   : > { %v1081_v5 = vpop.f32.mrf.mxu1  ;;  %v1326_v7 = vpop.f32.mrf.mxu0  ;;  %v1474_v4 = vperm.slane %v1470_v61, %v4781_v32  ;;  %v1493_v62 = vrot.slane %v1480_v37, 4  ;;  %vm1695_vm3 = vcmp.gt.f32.partialorder %v5257_v23, 0.0 }
 0x3a1   : > { %v1291_v10 = vpop.f32.mrf.mxu3  ;;  %v1256_v11 = vpop.f32.mrf.mxu2  ;;  %v1482_v27 = vsel %vm610_vm1, %v1481_v15, %v1081_v5  ;;  %v1515_v43 = vrot.slane %v1326_v7, 4 }
 0x3a2   : > { %v1486_v54 = vperm.slane %v1482_v27, %v4781_v32  ;;  %v1509_v0 = vrot.slane %v1291_v10, 4  ;;  %v1494_v7 = vsel %vm610_vm1, %v1493_v62, %v1474_v4 }
 0x3a3   : > { %v1516_v2 = vsel %vm610_vm1, %v1515_v43, %v1256_v11  ;;  %v1498_v18 = vperm.slane %v1494_v7, %v4796_v42 }
 0x3a4   : > { %v1500_v14 = vsel %vm610_vm1, %v1499_v53, %v1486_v54  ;;  %v1520_v13 = vperm.slane %v1516_v2, %v4781_v32 }
 0x3a5   : > { %v1504_v16 = vperm.slane %v1500_v14, %v4796_v42 }
 0x3a6   : > { %v1533_v19 = vrot.slane %v1520_v13, 4 }
 0x3a8   : > { %v1221_v20 = vpop.f32.mrf.mxu1  ;;  %v1466_v21 = vpop.f32.mrf.mxu0 }
 0x3a9   : > { %v1527_v28 = vrot.slane %v1466_v21, 4  ;;  %v1431_v29 = vpop.f32.mrf.mxu3  ;;  %v1396_v34 = vpop.f32.mrf.mxu2  ;;  %v1510_v15 = vsel %vm610_vm1, %v1509_v0, %v1221_v20  ;;  %v1505_v21 = vrot.slane %v1504_v16, 4  ;;  %v444_v0 = vld [vmem:[%s422_s21 + $0x8] sm:$0xff] }
 0x3aa   : > { %v1521_v51 = vrot.slane %v1431_v29, 4  ;;  %v1514_v11 = vperm.slane %v1510_v15, %v4781_v32  ;;  %v1507_v29 = vrot.slane %v1498_v18, 4  ;;  %vm1696_vm5 = vcmp.gt.f32.partialorder %v444_v0, 0.0 }
 0x3ab   : > { %v1528_v36 = vsel %vm610_vm1, %v1527_v28, %v1396_v34  ;;  %v1506_v24 = vsel %vm610_vm1, %v1505_v21, %v1498_v18 }
 0x3ac   : > { %v1532_v60 = vperm.slane %v1528_v36, %v4781_v32  ;;  %v1534_v37 = vsel %vm610_vm1, %v1533_v19, %v1514_v11  ;;  %v1508_v61 = vsel %vm610_vm1, %v1504_v16, %v1507_v29  ;;  %v1759_v19 = vpop.permute.xlu1 %1758 }
 0x3ad   : > { %v1538_v43 = vperm.slane %v1534_v37, %v4796_v42 }
 0x3ae   : > { %v1539_v12 = vrot.slane %v1532_v60, 4 }
 0x3af   : > { %v1547_v16 = vrot.slane %v1538_v43, 4 }
 0x3b0   : > { %v1361_v59 = vpop.f32.mrf.mxu1 }
 0x3b1   : > { %v1522_v63 = vsel %vm610_vm1, %v1521_v51, %v1361_v59 }
 0x3b2   : > { %v1526_v5 = vperm.slane %v1522_v63, %v4781_v32 }
 0x3b4   : > { %v1540_v10 = vsel %vm610_vm1, %v1539_v12, %v1526_v5 }
 0x3b5   : > { %v1544_v28 = vperm.slane %v1540_v10, %v4796_v42 }
 0x3b7   : > { %v1545_v54 = vrot.slane %v1544_v28, 4  ;;  %v1548_v7 = vsel %vm610_vm1, %v1544_v28, %v1547_v16 }
 0x3b9   : > { %v1546_v62 = vsel %vm610_vm1, %v1545_v54, %v1538_v43 }
 0x40d   : > { %v1658_v27 = vpop.f32.mrf.mxu1 }
 0x40e   : > { %v1659_v20 = vadd.f32 %v1658_v27, %v1506_v24  ;;  %v1763_v24 = vpop.permute.xlu1 %1762 }
 0x410   : > { %v1691_v34 = vmul.f32 0.35355338, %v1659_v20 }
 0x412   : > { %v1701_v53 = vsel %vm1695_vm3, %v1691_v34, -1e+30 }
 0x413   : > { %v1685_v51 = vpop.f32.mrf.mxu2  ;;  %v1706_v36 = vsel %vm1705_vm4, %v1701_v53, -inf }
 0x414   : > { %v1686_v4 = vadd.f32 %v1685_v51, %v1508_v61  ;;  %1707 = vmax.xlane.f32.xlu0 %v1706_v36 }
 0x415   : > { %v1661_v14 = vpop.f32.mrf.mxu1 }
 0x416   : > { %v1693_v59 = vmul.f32 0.35355338, %v1686_v4  ;;  %v1662_v60 = vadd.f32 %v1661_v14, %v1546_v62  ;;  %v1767_v27 = vpop.permute.xlu1 %1766 }
 0x418   : > { %v1703_v63 = vsel %vm1695_vm3, %v1693_v59, -1e+30  ;;  %v1692_v5 = vmul.f32 0.35355338, %v1662_v60 }
 0x419   : > { %v1712_v2 = vsel %vm1705_vm4, %v1703_v63, -inf }
 0x41a   : > { %1713 = vmax.xlane.f32.xlu1 %v1712_v2  ;;  %v1702_v15 = vsel %vm1696_vm5, %v1692_v5, -1e+30 }
 0x41b   : > { %v1688_v12 = vpop.f32.mrf.mxu2  ;;  %v1709_v18 = vsel %vm1705_vm4, %v1702_v15, -inf }
 0x41c   : > { %v1689_v13 = vadd.f32 %v1688_v12, %v1548_v7 }
 0x41e   : > { %v1694_v21 = vmul.f32 0.35355338, %v1689_v13  ;;  %v1765_v20 = vpop.permute.xlu1 %1764 }
 0x420   : > { %v1704_v10 = vsel %vm1696_vm5, %v1694_v21, -1e+30 }
 0x421   : > { %v1715_v11 = vsel %vm1705_vm4, %v1704_v10, -inf }
 0x422   : > { %1710 = vmax.xlane.f32.xlu1 %v1709_v18  ;;  %v1761_v18 = vpop.permute.xlu2 %1760 }
 0x428   : > { %1770 = vrot.lane.b32.xlu0 %v4810_v52, %s4634_s20 }
 0x42a   : > { %1716 = vmax.xlane.f32.xlu1 %v1715_v11  ;;  %v1769_v21 = vpop.permute.xlu2 %1768 }
 0x432   : > { %v1773_v0 = vpop.permute.xlu2 %1772 }
 0x487   : > { %v1708_v28 = vpop.xlane.xlu0 %1707 }
 0x488   : > { %v1718_v29 = vsub.f32 %v1701_v53, %v1708_v28 }
 0x48a   : > { %v1722_v34 = vmul.f32 1.442695, %v1718_v29 }
 0x48c   : > { %4595 = vpow2.f32 %v1722_v34 }
 0x48d   : > { %v1714_v37 = vpop.xlane.xlu1 %1713 }
 0x48e   : > { %v1720_v62 = vsub.f32 %v1703_v63, %v1714_v37 }
 0x490   : > { %v1726_v2 = vmul.f32 1.442695, %v1720_v62 }
 0x492   : > { %v4596_v54 = vpop.eup %4595 }
 0x493   : > { %v1730_v61 = vsel %vm1695_vm3, %v4596_v54, 0.0 }
 0x494   : > { %v1734_v51 = vsel %vm1705_vm4, %v1730_v61, 0.0 }
 0x495   : > { %v1711_v36 = vpop.xlane.xlu1 %1710  ;;  %1735 = vadd.xlane.f32.xlu1 %v1734_v51 }
 0x496   : > { %v1719_v52 = vsub.f32 %v1702_v15, %v1711_v36 }
 0x498   : > { %v1724_v43 = vmul.f32 1.442695, %v1719_v52 }
 0x49a   : > { %4597 = vpow2.f32 %v1724_v43 }
 0x49d   : > { %v1717_v4 = vpop.xlane.xlu1 %1716 }
 0x49e   : > { %v1721_v14 = vsub.f32 %v1704_v10, %v1717_v4  ;;  %v1771_v10 = vpop.permute.xlu0 %1770 }
 0x4a0   : > { %v4598_v59 = vpop.eup %4597  ;;  %v1728_v60 = vmul.f32 1.442695, %v1721_v14 }
 0x4a1   : > { %v1731_v53 = vsel %vm1696_vm5, %v4598_v59, 0.0 }
 0x4a2   : > { %4599 = vpow2.f32 %v1728_v60  ;;  %v1737_v5 = vsel %vm1705_vm4, %v1731_v53, 0.0 }
 0x4a3   : > { %1738 = vadd.xlane.f32.xlu2 %v1737_v5  ;;  %4601 = vpow2.f32 %v1726_v2 }
 0x4a8   : > { %v4600_v16 = vpop.eup %4599 }
 0x4a9   : > { %v1733_v12 = vsel %vm1696_vm5, %v4600_v16, 0.0  ;;  %v4602_v13 = vpop.eup %4601 }
 0x4aa   : > { %v1743_v7 = vsel %vm1705_vm4, %v1733_v12, 0.0  ;;  %v1732_v63 = vsel %vm1695_vm3, %v4602_v13, 0.0 }
 0x4ab   : > { %1744 = vadd.xlane.f32.xlu0 %v1743_v7  ;;  %v1740_v15 = vsel %vm1705_vm4, %v1732_v63, 0.0 }
 0x4b3   : > { %1741 = vadd.xlane.f32.xlu0 %v1740_v15 }
 0x4cc   : > { %1814 = vxpose.xlu2.b32.start [1/4] (short) (narrow) %v1767_v27, 8 }
 0x4cf   : > { %1782 = vxpose.xlu1.b32.start [1/4] (short) (narrow) %v1759_v19, 8 }
 0x4d4   : > { %1815 = vxpose.xlu2.b32.cont [2/4] (short) (narrow) %v1769_v21, 8 }
 0x4d7   : > { %1783 = vxpose.xlu1.b32.cont [2/4] (short) (narrow) %v1761_v18, 8 }
 0x4dc   : > { %1816 = vxpose.xlu2.b32.cont [3/4] (short) (narrow) %v1771_v10, 8  ;;  %2640 = vxpose.xlu0.b32.start.end [1/1] (short) (narrow) %v4766_v25, 8 }
 0x4df   : > { %1784 = vxpose.xlu1.b32.cont [3/4] (short) (narrow) %v1763_v24, 8 }
 0x4e4   : > { %1817 = vxpose.xlu2.b32.end [4/4] (short) (narrow) %v1773_v0, 8 }
 0x4e7   : > { %1785 = vxpose.xlu1.b32.end [4/4] (short) (narrow) %v1765_v20, 8 }
 0x4ec   : > { %2544 = vxpose.xlu2.b32.start.end [1/1] (short) (narrow) %v4789_v35, 8 }
 0x4ef   : > { %2608 = vxpose.xlu1.b32.start.end [1/1] (short) (narrow) %v4779_v31, 8 }
 0x4f4   : > { %2576 = vxpose.xlu2.b32.start.end [1/1] (short) (narrow) %v4774_v30, 8 }
 0x508   : > { %v1736_v23 = vpop.xlane.xlu1 %1735 }
 0x509   : > { %v1746_v19 = vmax.f32 %v1736_v23, 1e-30 }
 0x516   : > { %v1739_v11 = vpop.xlane.xlu2 %1738 }
 0x517   : > { %v1747_v27 = vmax.f32 %v1739_v11, 1e-30 }
 0x519   : > { %4603 = vrcp.f32 %v1747_v27 }
 0x51a   : > { %4605 = vrcp.f32 %v1746_v19 }
 0x51e   : > { %v1745_v28 = vpop.xlane.xlu0 %1744 }
 0x51f   : > { %v4604_v29 = vpop.eup %4603  ;;  %v1749_v34 = vmax.f32 %v1745_v28, 1e-30 }
 0x520   : > { %v1755_v25 = vmul.f32 %v4604_v29, %v1731_v53  ;;  %v4606_v24 = vpop.eup %4605 }
 0x521   : > { %4607 = vrcp.f32 %v1749_v34  ;;  %v1754_v20 = vmul.f32 %v4606_v24, %v1730_v61  ;;  %v5731_v34 = vld [vmem:[#allocation13_spill] sm:$0xff] }
 0x522   : > { %4499 = vmatpush.xpose.msk.msrb.mxu3 %vm1705_vm4, %v1755_v25  ;;  %v2129_v11 = vperm.slane %v1755_v25, %v4781_v32 }
 0x523   : > { %v2072_v54 = vrot.slane %v1754_v20, 4  ;;  %v2077_v51 = vperm.slane %v1754_v20, %v4781_v32 }
 0x525   : > { %v2073_v43 = vsel %vm610_vm1, 0.0, %v2072_v54  ;;  %v2094_v4 = vrot.slane %v2077_v51, 4  ;;  %v5738_v54 = vld [vmem:[#allocation6_spill] sm:$0xff] }
 0x526   : > { %4500 = vmatpush.xpose.msk.msrb.mxu3 %vm1705_vm4, %v1754_v20  ;;  %v1742_v31 = vpop.xlane.xlu0 %1741  ;;  %v2081_v14 = vperm.slane %v2073_v43, %v4781_v32 }
 0x527   : > { %v4608_v35 = vpop.eup %4607  ;;  %v1748_v30 = vmax.f32 %v1742_v31, 1e-30  ;;  %v5734_v31 = vld [vmem:[#allocation2_spill] sm:$0xff] }
 0x528   : > { %v1757_v37 = vmul.f32 %v4608_v35, %v1733_v12  ;;  %v5735_v35 = vld [vmem:[#allocation3_spill] sm:$0xff] }
 0x529   : > { %4609 = vrcp.f32 %v1748_v30 }
 0x52a   : > { %4502 = vmatpush.xpose.msk.msra.mxu3 %vm1705_vm4, %v1757_v37  ;;  %v2139_v13 = vperm.slane %v1757_v37, %v4781_v32  ;;  %v2134_v15 = vrot.slane %v1757_v37, 4  ;;  %v5736_v37 = vld [vmem:[#allocation4_spill] sm:$0xff] }
 0x52c   : > { %v2144_v19 = vrot.slane %v2139_v13, 4  ;;  %v2135_v27 = vsel %vm610_vm1, 0.0, %v2134_v15 }
 0x52e   : > { %v2145_v29 = vsel %vm610_vm1, %v2144_v19, %v2129_v11 }
 0x52f   : > { %v4610_v36 = vpop.eup %4609 }
 0x530   : > { %v1756_v52 = vmul.f32 %v4610_v36, %v1732_v63  ;;  %v2106_v63 = vrot.slane %v2081_v14, 4  ;;  %v5739_v36 = vld [vmem:[#allocation7_spill] sm:$0xff] }
 0x532   : > { %4503 = vmatpush.xpose.msk.msra.mxu3 %vm1705_vm4, %v1756_v52  ;;  %v2082_v61 = vrot.slane %v1756_v52, 4  ;;  %v2087_v62 = vperm.slane %v1756_v52, %v4781_v32  ;;  %v5740_v52 = vld [vmem:[#allocation8_spill] sm:$0xff] }
 0x534   : > { %v2083_v59 = vsel %vm610_vm1, 0.0, %v2082_v61  ;;  %v2092_v60 = vrot.slane %v2087_v62, 4  ;;  %v2095_v53 = vsel %vm610_vm1, %v2087_v62, %v2094_v4  ;;  %v5741_v4 = vld [vmem:[#allocation9_spill] sm:$0xff]  ;;  %v5742_v61 = vld [vmem:[#allocation10_spill] sm:$0xff] }
 0x535   : > { %v2091_v2 = vperm.slane %v2083_v59, %v4781_v32  ;;  %v5305_v5 = vperm.slane %v2095_v53, %v4796_v42  ;;  %v5743_v59 = vld [vmem:[#allocation11_spill] sm:$0xff] }
 0x536   : > { %v2093_v16 = vsel %vm610_vm1, %v2092_v60, %v2077_v51  ;;  %v5744_v60 = vld [vmem:[#allocation12_spill] sm:$0xff] }
 0x537   : > { %v2104_v12 = vrot.slane %v2091_v2, 4  ;;  %4507 = vmatmul.msk.f32.vlgmr.msra.gmra.mxu2 %vm1705_vm4, %v5305_v5  ;;  %v2099_v7 = vperm.slane %v2093_v16, %v4796_v42  ;;  %v2107_v10 = vsel %vm610_vm1, %v2091_v2, %v2106_v63  ;;  %v2118_v51 = vrot.slane %v5305_v5, 4  ;;  %v5745_v2 = vld [vmem:[#allocation14_spill] sm:$0xff]  ;;  %v5746_v5 = vld [vmem:[#allocation15_spill] sm:$0xff] }
 0x538   : > { %2421 = vmatpush.msra.mxu2 %v5004_v39  ;;  %v2124_v39 = vrot.slane %v1755_v25, 4  ;;  %v5325_v28 = vperm.slane %v2107_v10, %v4796_v42 }
 0x539   : > { %4505 = vmatmul.msk.f32.vlgmr.msrb.gmra.mxu0 %vm1705_vm4, %v2099_v7  ;;  %v2116_v18 = vrot.slane %v2099_v7, 4  ;;  %v2105_v21 = vsel %vm610_vm1, %v2104_v12, %v2081_v14  ;;  %v2119_v43 = vsel %vm610_vm1, 0.0, %v2118_v51 }
 0x53a   : > { %2375 = vmatpush.msrb.mxu0 %v4998_v57  ;;  %2422 = vmatpush.msra.mxu2 %v5029_v56  ;;  %v2111_v23 = vperm.slane %v2105_v21, %v4796_v42  ;;  %v2146_v56 = vrot.slane %v2129_v11, 4  ;;  %v2122_v14 = vrot.slane %v5325_v28, 4  ;;  %v5748_v21 = vld [vmem:[#allocation19_spill] sm:$0xff] }
 0x53b   : > { %v2117_v0 = vsel %vm610_vm1, 0.0, %v2116_v18 }
 0x53c   : > { %4506 = vmatmul.msk.f32.vlgmr.msra.gmra.mxu1 %vm1705_vm4, %v2117_v0  ;;  %2376 = vmatpush.msrb.mxu0 %v5017_v50  ;;  %v2120_v57 = vrot.slane %v2111_v23, 4  ;;  %v2143_v50 = vperm.slane %v2135_v27, %v4781_v32  ;;  %v2123_v53 = vsel %vm610_vm1, 0.0, %v2122_v14 }
 0x53d   : > { %2423 = vmatpush.msra.mxu2 %v5054_v45  ;;  %2398 = vmatpush.msra.mxu1 %v5008_v44  ;;  %v2125_v45 = vsel %vm610_vm1, 0.0, %v2124_v39  ;;  %v2147_v44 = vsel %vm610_vm1, %v2139_v13, %v2146_v56  ;;  %v5747_v13 = vld [vmem:[#allocation17_spill] sm:$0xff] }
 0x53e   : > { %2377 = vmatpush.msrb.mxu0 %v5043_v48  ;;  %v2151_v48 = vperm.slane %v2145_v29, %v4796_v42 }
 0x53f   : > { %4511 = vmatmul.msk.f32.vlgmr.msrb.gmra.mxu2 %vm1705_vm4, %v5325_v28  ;;  %2399 = vmatpush.msra.mxu1 %v5035_v38  ;;  %v2121_v38 = vsel %vm610_vm1, 0.0, %v2120_v57 }
 0x540   : > { %2424 = vmatpush.msra.mxu2 %v5087_v40  ;;  %2378 = vmatpush.msrb.mxu0 %v5071_v41  ;;  %v2133_v41 = vperm.slane %v2125_v45, %v4781_v32  ;;  %v2156_v40 = vrot.slane %v2143_v50, 4 }
 0x541   : > { %4509 = vmatmul.msk.f32.vlgmr.msra.gmra.mxu0 %vm1705_vm4, %v2111_v23  ;;  %2400 = vmatpush.msra.mxu1 %v5060_v33  ;;  %v5732_v33 = vld [vmem:[#allocation16_spill] sm:$0xff] }
 0x542   : > { %2513 = vmatpush.msrb.mxu2 %v5093_v47  ;;  %2467 = vmatpush.msra.mxu0 %v5081_v46  ;;  %v2155_v47 = vperm.slane %v2147_v44, %v4796_v42  ;;  %v2158_v46 = vrot.slane %v2133_v41, 4 }
 0x543   : > { %2401 = vmatpush.msra.mxu1 %v5731_v34 }
 0x544   : > { %2514 = vmatpush.msrb.mxu2 %v5122_v17  ;;  %4510 = vmatmul.msk.f32.vlgmr.msrb.gmra.mxu1 %vm1705_vm4, %v2121_v38  ;;  %v2168_v17 = vrot.slane %v2151_v48, 4  ;;  %v2159_v25 = vsel %vm610_vm1, %v2143_v50, %v2158_v46  ;;  %v2170_v7 = vrot.slane %v2155_v47, 4 }
 0x545   : > { %2468 = vmatpush.msra.mxu0 %v5125_v9  ;;  %2490 = vmatpush.msrb.mxu1 %v5102_v26  ;;  %v2157_v9 = vsel %vm610_vm1, %v2156_v40, %v2133_v41 }
 0x546   : > { %2515 = vmatpush.msrb.mxu2 %v5149_v22  ;;  %v5733_v22 = vld [vmem:[#allocation18_spill] sm:$0xff]  ;;  %v2169_v26 = vsel %vm610_vm1, 0.0, %v2168_v17  ;;  %v2171_v0 = vsel %vm610_vm1, 0.0, %v2170_v7 }
 0x547   : > { %2469 = vmatpush.msra.mxu0 %v5153_v3  ;;  %4515 = vmatmul.msk.f32.vlgmr.msra.gmra.mxu2 %vm1705_vm4, %v2155_v47  ;;  %v2163_v3 = vperm.slane %v2157_v9, %v4796_v42 }
 0x548   : > { %2516 = vmatpush.msrb.mxu2 %v5172_v1  ;;  %2491 = vmatpush.msrb.mxu1 %v5732_v33  ;;  %v2167_v1 = vperm.slane %v2159_v25, %v4796_v42 }
 0x549   : > { %4513 = vmatmul.msk.f32.vlgmr.msrb.gmra.mxu0 %vm1705_vm4, %v2151_v48  ;;  %v2172_v24 = vrot.slane %v2163_v3, 4 }
 0x54a   : > { %2470 = vmatpush.msra.mxu0 %v5176_v49  ;;  %2492 = vmatpush.msrb.mxu1 %v5733_v22  ;;  %v2174_v56 = vrot.slane %v2167_v1, 4 }
 0x54b   : > { %v2173_v20 = vsel %vm610_vm1, 0.0, %v2172_v24 }
 0x54c   : > { %4514 = vmatmul.msk.f32.vlgmr.msra.gmra.mxu1 %vm1705_vm4, %v2169_v26  ;;  %v2175_v48 = vsel %vm610_vm1, 0.0, %v2174_v56 }
 0x54d   : > { %2493 = vmatpush.msrb.mxu1 %v5179_v55  ;;  %v5737_v55 = vld [vmem:[#allocation5_spill] sm:$0xff] }
 0x54f   : > { %4519 = vmatmul.msk.f32.vlgmr.msrb.gmra.mxu2 %vm1705_vm4, %v2167_v1 }
 0x551   : > { %4517 = vmatmul.msk.f32.vlgmr.msra.gmra.mxu0 %vm1705_vm4, %v2163_v3 }
 0x554   : > { %4518 = vmatmul.msk.f32.vlgmr.msrb.gmra.mxu1 %vm1705_vm4, %v2173_v20 }
 0x565   : > { %v1830_v30 = vpop.trf.xlu2 }
 0x573   : > { %v1798_v49 = vpop.trf.xlu1 }
 0x574   : > { %4501 = vmatmul.msk.f32.vlgmr.msrb.gmra.mxu3 %vm1705_vm4, %v1798_v49 }
 0x575   : > { %2260 = vmatpush.msrb.mxu3 %v5734_v31 }
 0x577   : > { %2261 = vmatpush.msrb.mxu3 %v5735_v35 }
 0x579   : > { %2262 = vmatpush.msrb.mxu3 %v5736_v37 }
 0x57b   : > { %2263 = vmatpush.msrb.mxu3 %v5737_v55 }
 0x57c   : > { %4504 = vmatmul.msk.f32.vlgmr.msra.gmra.mxu3 %vm1705_vm4, %v1830_v30 }
 0x57d   : > { %2352 = vmatpush.msra.mxu3 %v5738_v54 }
 0x57f   : > { %2353 = vmatpush.msra.mxu3 %v5739_v36 }
 0x580   : > { %v2656_v63 = vpop.trf.xlu0 }
 0x581   : > { %2354 = vmatpush.msra.mxu3 %v5740_v52  ;;  %v2684_v18 = vrot.slane %v2656_v63, 4 }
 0x583   : > { %2355 = vmatpush.msra.mxu3 %v5741_v4 }
 0x584   : > { %4508 = vmatmul.msk.f32.vlgmr.msrb.gmra.mxu3 %vm1705_vm4, %v2119_v43 }
 0x585   : > { %2444 = vmatpush.msrb.mxu3 %v5742_v61  ;;  %v2560_v62 = vpop.trf.xlu2 }
 0x586   : > { %v2674_v15 = vrot.slane %v2560_v62, 4 }
 0x587   : > { %2445 = vmatpush.msrb.mxu3 %v5743_v59 }
 0x589   : > { %2446 = vmatpush.msrb.mxu3 %v5744_v60 }
 0x58b   : > { %2447 = vmatpush.msrb.mxu3 %v5745_v2 }
 0x58c   : > { %4512 = vmatmul.msk.f32.vlgmr.msra.gmra.mxu3 %vm1705_vm4, %v2123_v53 }
 0x58d   : > { %2536 = vmatpush.msra.mxu3 %v5746_v5  ;;  %v2592_v16 = vpop.trf.xlu2 }
 0x58e   : > { %v2686_v12 = vrot.slane %v2592_v16, 4  ;;  %v2685_v39 = vsel %vm610_vm1, %v2684_v18, %v2592_v16 }
 0x58f   : > { %2537 = vmatpush.msra.mxu3 %v5747_v13 }
 0x590   : > { %v2687_v10 = vsel %vm610_vm1, %v2656_v63, %v2686_v12  ;;  %v4591_v12 = vld [vmem:[%s5691_s8] ss:$0 sm:$0xff] }
 0x591   : > { %2538 = vmatpush.msra.mxu3 %v5748_v21  ;;  %v2695_v28 = vperm.slane %v2687_v10, %v4781_v32 }
 0x593   : > { %2539 = vmatpush.msra.mxu3 %v5186_v58  ;;  %v2624_v23 = vpop.trf.xlu1  ;;  %v2691_v58 = vperm.slane %v2685_v39, %v4781_v32  ;;  %v2708_v46 = vrot.slane %v2695_v28, 4 }
 0x594   : > { %4516 = vmatmul.msk.f32.vlgmr.msrb.gmra.mxu3 %vm1705_vm4, %v2171_v0  ;;  %v2672_v11 = vrot.slane %v2624_v23, 4  ;;  %v2675_v19 = vsel %vm610_vm1, %v2624_v23, %v2674_v15 }
 0x595   : > { %v2683_v27 = vperm.slane %v2675_v19, %v4781_v32  ;;  %v2696_v31 = vrot.slane %v2691_v58, 4 }
 0x596   : > { %v2673_v57 = vsel %vm610_vm1, %v2672_v11, %v2560_v62 }
 0x597   : > { %v2679_v50 = vperm.slane %v2673_v57, %v4781_v32  ;;  %v2710_v29 = vrot.slane %v2683_v27, 4  ;;  %v2709_v9 = vsel %vm610_vm1, %v2708_v46, %v2683_v27 }
 0x598   : > { %v5417_v51 = vperm.slane %v2709_v9, %v4796_v42 }
 0x599   : > { %v2698_v45 = vrot.slane %v2679_v50, 4  ;;  %v2711_v44 = vsel %vm610_vm1, %v2695_v28, %v2710_v29  ;;  %v2697_v35 = vsel %vm610_vm1, %v2696_v31, %v2679_v50 }
 0x59a   : > { %v2719_v38 = vperm.slane %v2711_v44, %v4796_v42  ;;  %v2703_v37 = vperm.slane %v2697_v35, %v4796_v42  ;;  %v2724_v52 = vrot.slane %v5417_v51, 4 }
 0x59b   : > { %v2699_v41 = vsel %vm610_vm1, %v2691_v58, %v2698_v45 }
 0x59c   : > { %4520 = vmatmul.msk.f32.vlgmr.msra.gmra.mxu3 %vm1705_vm4, %v2175_v48  ;;  %v2726_v40 = vrot.slane %v2719_v38, 4  ;;  %v2707_v47 = vperm.slane %v2699_v41, %v4796_v42  ;;  %v2720_v55 = vrot.slane %v2703_v37, 4  ;;  %v2725_v43 = vsel %vm610_vm1, 0.0, %v2724_v52 }
 0x59e   : > { %v2727_v34 = vsel %vm610_vm1, 0.0, %v2726_v40  ;;  %v2722_v17 = vrot.slane %v2707_v47, 4  ;;  %v2721_v36 = vsel %vm610_vm1, 0.0, %v2720_v55 }
 0x59f   : > { %2952 = vxpose.xlu0.b32.start.end [1/1] (short) (narrow) %v2727_v34, 8 }
 0x5a0   : > { %v2723_v33 = vsel %vm610_vm1, 0.0, %v2722_v17 }
 0x5a1   : > { %2824 = vxpose.xlu1.b32.start.end [1/1] (short) (narrow) %v2723_v33, 8 }
 0x5b6   : > { %v2196_v25 = vpop.f32.mrf.mxu0 }
 0x5b7   : > { %3024 = vxpose.xlu2.b32.start.end [1/1] (short) (narrow) %v2196_v25, 8 }
 0x5b9   : > { %v2219_v22 = vpop.f32.mrf.mxu1 }
 0x5ba   : > { %v2242_v26 = vpop.f32.mrf.mxu2  ;;  %3056 = vxpose.xlu0.b32.start.end [1/1] (short) (narrow) %v2219_v22, 8 }
 0x5be   : > { %v2288_v3 = vpop.f32.mrf.mxu0 }
 0x5bf   : > { %3152 = vxpose.xlu2.b32.start.end [1/1] (short) (narrow) %v2288_v3, 8 }
 0x5c1   : > { %v2311_v1 = vpop.f32.mrf.mxu1 }
 0x5c2   : > { %v2334_v24 = vpop.f32.mrf.mxu2  ;;  %3088 = vxpose.xlu0.b32.start.end [1/1] (short) (narrow) %v2242_v26, 8 }
 0x5c3   : > { %3216 = vxpose.xlu1.b32.start.end [1/1] (short) (narrow) %v2334_v24, 8 }
 0x5c6   : > { %v2380_v20 = vpop.f32.mrf.mxu0 }
 0x5c7   : > { %3184 = vxpose.xlu2.b32.start.end [1/1] (short) (narrow) %v2311_v1, 8 }
 0x5c9   : > { %v2403_v49 = vpop.f32.mrf.mxu1 }
 0x5ca   : > { %3280 = vxpose.xlu0.b32.start.end [1/1] (short) (narrow) %v2380_v20, 8  ;;  %v2426_v30 = vpop.f32.mrf.mxu2 }
 0x5cb   : > { %3312 = vxpose.xlu1.b32.start.end [1/1] (short) (narrow) %v2403_v49, 8 }
 0x5ce   : > { %v2472_v54 = vpop.f32.mrf.mxu0 }
 0x5d1   : > { %v2495_v4 = vpop.f32.mrf.mxu1 }
 0x5d2   : > { %3344 = vxpose.xlu0.b32.start.end [1/1] (short) (narrow) %v2426_v30, 8  ;;  %v2518_v61 = vpop.f32.mrf.mxu2 }
 0x5d3   : > { %2920 = vxpose.xlu1.b32.start.end [1/1] (short) (narrow) %v2719_v38, 8 }
 0x5da   : > { %3408 = vxpose.xlu0.b32.start.end [1/1] (short) (narrow) %v2472_v54, 8 }
 0x5db   : > { %2760 = vxpose.xlu1.b32.start.end [1/1] (short) (narrow) %v2721_v36, 8 }
 0x5e2   : > { %2888 = vxpose.xlu0.b32.start.end [1/1] (short) (narrow) %v2725_v43, 8 }
 0x5e3   : > { %2792 = vxpose.xlu1.b32.start.end [1/1] (short) (narrow) %v2707_v47, 8 }
 0x5eb   : > { %3440 = vxpose.xlu1.b32.start.end [1/1] (short) (narrow) %v2495_v4, 8 }
 0x5f3   : > { %3472 = vxpose.xlu1.b32.start.end [1/1] (short) (narrow) %v2518_v61, 8 }
 0x5f7   : > { %v5422_v62 = vpop.f32.mrf.mxu3 }
 0x5ff   : > { %v5424_v14 = vpop.f32.mrf.mxu3 }
 0x607   : > { %v2265_v59 = vpop.f32.mrf.mxu3 }
 0x608   : > { %3120 = vxpose.xlu2.b32.start.end [1/1] (short) (narrow) %v2265_v59, 8 }
 0x60f   : > { %v2357_v60 = vpop.f32.mrf.mxu3 }
 0x610   : > { %3248 = vxpose.xlu1.b32.start.end [1/1] (short) (narrow) %v2357_v60, 8 }
 0x617   : > { %v2449_v53 = vpop.f32.mrf.mxu3 }
 0x618   : > { %3376 = vxpose.xlu2.b32.start.end [1/1] (short) (narrow) %v2449_v53, 8  ;;  %2728 = vxpose.xlu1.b32.start.end [1/1] (short) (narrow) %v2703_v37, 8 }
 0x61f   : > { %v2541_v2 = vpop.f32.mrf.mxu3 }
 0x620   : > { %3504 = vxpose.xlu2.b32.start.end [1/1] (short) (narrow) %v2541_v2, 8 }
 0x643   : > { %v5435_v21 = vpop.trf.xlu0 }
 0x645   : > { %v2840_v5 = vpop.trf.xlu1 }
 0x646   : > { %v2990_v63 = vrot.slane %v2840_v5, 4 }
 0x650   : > { %v3040_v10 = vpop.trf.xlu2 }
 0x658   : > { %v3168_v23 = vpop.trf.xlu2 }
 0x65e   : > { %v3072_v0 = vpop.trf.xlu0 }
 0x660   : > { %v3200_v39 = vpop.trf.xlu2 }
 0x666   : > { %v3104_v11 = vpop.trf.xlu0 }
 0x667   : > { %v3232_v16 = vpop.trf.xlu1  ;;  %v3536_v50 = vrot.slane %v3104_v11, 4 }
 0x668   : > { %v3548_v38 = vrot.slane %v3232_v16, 4 }
 0x669   : > { %v3537_v44 = vsel %vm610_vm1, %v3536_v50, %v3040_v10 }
 0x66a   : > { %v3541_v41 = vperm.slane %v3537_v44, %v4781_v32  ;;  %v3549_v34 = vsel %vm610_vm1, %v3548_v38, %v3168_v23 }
 0x66b   : > { %v3553_v26 = vperm.slane %v3549_v34, %v4781_v32 }
 0x66c   : > { %v3562_v46 = vrot.slane %v3541_v41, 4 }
 0x66d   : > { %v3574_v36 = vrot.slane %v3553_v26, 4 }
 0x66e   : > { %v3296_v27 = vpop.trf.xlu0 }
 0x66f   : > { %v3328_v7 = vpop.trf.xlu1 }
 0x672   : > { %4139 = vrot.lane.b32.xlu1 %v4591_v12, %s4638_s24 }
 0x676   : > { %v3360_v29 = vpop.trf.xlu0 }
 0x677   : > { %v5430_v13 = vpop.trf.xlu1  ;;  %v3592_v40 = vrot.slane %v3360_v29, 4 }
 0x679   : > { %v3593_v9 = vsel %vm610_vm1, %v3592_v40, %v3296_v27 }
 0x67a   : > { %v3597_v49 = vperm.slane %v3593_v9, %v4781_v32 }
 0x67c   : > { %v3618_v61 = vrot.slane %v3597_v49, 4 }
 0x67e   : > { %v3424_v22 = vpop.trf.xlu0 }
 0x67f   : > { %v2776_v15 = vpop.trf.xlu1 }
 0x680   : > { %v5433_v18 = vsel %vm610_vm1, %v2990_v63, %v2776_v15 }
 0x681   : > { %v2995_v4 = vperm.slane %v5433_v18, %v4781_v32 }
 0x687   : > { %v2808_v19 = vpop.trf.xlu1 }
 0x688   : > { %v2984_v16 = vrot.slane %v2808_v19, 4 }
 0x68f   : > { %v3456_v28 = vpop.trf.xlu1 }
 0x697   : > { %v3488_v45 = vpop.trf.xlu1 }
 0x698   : > { %v3604_v47 = vrot.slane %v3488_v45, 4 }
 0x69a   : > { %v3605_v3 = vsel %vm610_vm1, %v3604_v47, %v3424_v22 }
 0x69b   : > { %v3609_v37 = vperm.slane %v3605_v3, %v4781_v32 }
 0x69d   : > { %v3630_v12 = vrot.slane %v3609_v37, 4 }
 0x6a1   : > { %v3136_v57 = vpop.trf.xlu2 }
 0x6a2   : > { %v3542_v56 = vrot.slane %v3136_v57, 4  ;;  %v3008_v57 = vrot.slane %v2995_v4, 4 }
 0x6a4   : > { %v3543_v58 = vsel %vm610_vm1, %v3542_v56, %v3072_v0 }
 0x6a5   : > { %v3547_v48 = vperm.slane %v3543_v58, %v4781_v32 }
 0x6a7   : > { %v3560_v17 = vrot.slane %v3547_v48, 4  ;;  %v3563_v20 = vsel %vm610_vm1, %v3547_v48, %v3562_v46 }
 0x6a8   : > { %v3571_v54 = vperm.slane %v3563_v20, %v4796_v42 }
 0x6a9   : > { %v3561_v35 = vsel %vm610_vm1, %v3560_v17, %v3541_v41 }
 0x6aa   : > { %v3567_v43 = vperm.slane %v3561_v35, %v4796_v42  ;;  %v3590_v63 = vrot.slane %v3571_v54, 4 }
 0x6ac   : > { %v3586_v23 = vrot.slane %v3567_v43, 4 }
 0x6b1   : > { %v3392_v33 = vpop.trf.xlu2 }
 0x6b2   : > { %v3598_v25 = vrot.slane %v3392_v33, 4 }
 0x6b4   : > { %v3599_v1 = vsel %vm610_vm1, %v3598_v25, %v3328_v7  ;;  %v3264_v24 = vpop.trf.xlu1 }
 0x6b5   : > { %v3554_v31 = vrot.slane %v3264_v24, 4  ;;  %v3603_v30 = vperm.slane %v3599_v1, %v4781_v32 }
 0x6b7   : > { %v3555_v55 = vsel %vm610_vm1, %v3554_v31, %v3200_v39  ;;  %v3616_v60 = vrot.slane %v3603_v30, 4  ;;  %v3619_v18 = vsel %vm610_vm1, %v3603_v30, %v3618_v61 }
 0x6b8   : > { %v3559_v52 = vperm.slane %v3555_v55, %v4781_v32  ;;  %v3627_v58 = vperm.slane %v3619_v18, %v4796_v42 }
 0x6b9   : > { %v3520_v59 = vpop.trf.xlu2 }
 0x6ba   : > { %v3572_v53 = vrot.slane %v3559_v52, 4  ;;  %v3610_v2 = vrot.slane %v3520_v59, 4  ;;  %v3575_v5 = vsel %vm610_vm1, %v3559_v52, %v3574_v36  ;;  %v3646_v40 = vrot.slane %v3627_v58, 4 }
 0x6bb   : > { %v3583_v7 = vperm.slane %v3575_v5, %v4796_v42 }
 0x6bc   : > { %v3611_v15 = vsel %vm610_vm1, %v3610_v2, %v3456_v28  ;;  %v2744_v10 = vpop.trf.xlu1  ;;  %v3573_v0 = vsel %vm610_vm1, %v3572_v53, %v3553_v26  ;;  %v3617_v28 = vsel %vm610_vm1, %v3616_v60, %v3597_v49  ;;  %v2904_v49 = vpop.trf.xlu0 }
 0x6bd   : > { %v3615_v11 = vperm.slane %v3611_v15, %v4781_v32  ;;  %v2985_v39 = vsel %vm610_vm1, %v2984_v16, %v2744_v10  ;;  %v3591_v27 = vsel %vm610_vm1, %v3583_v7, %v3590_v63  ;;  %v3579_v19 = vperm.slane %v3573_v0, %v4796_v42 }
 0x6be   : > { %v2989_v56 = vperm.slane %v2985_v39, %v4781_v32  ;;  %3744 = vxpose.xlu2.b32.start [1/2] (short) (narrow) %v3591_v27, 8  ;;  %v3623_v48 = vperm.slane %v3617_v28, %v4796_v42  ;;  %v3588_v46 = vrot.slane %v3583_v7, 4 }
 0x6bf   : > { %v3628_v50 = vrot.slane %v3615_v11, 4  ;;  %v3587_v29 = vsel %vm610_vm1, %v3579_v19, %v3586_v23  ;;  %v3631_v45 = vsel %vm610_vm1, %v3615_v11, %v3630_v12  ;;  %v3584_v26 = vrot.slane %v3579_v19, 4 }
 0x6c0   : > { %v3009_v44 = vsel %vm610_vm1, %v3008_v57, %v2989_v56  ;;  %3680 = vxpose.xlu0.b32.start [1/2] (short) (narrow) %v3587_v29, 8  ;;  %v3639_v38 = vperm.slane %v3631_v45, %v4796_v42  ;;  %v3642_v17 = vrot.slane %v3623_v48, 4  ;;  %v3589_v9 = vsel %vm610_vm1, %v3588_v46, %v3571_v54 }
 0x6c1   : > { %v3629_v41 = vsel %vm610_vm1, %v3628_v50, %v3609_v37  ;;  %v3585_v3 = vsel %vm610_vm1, %v3584_v26, %v3567_v43  ;;  %v2996_v54 = vrot.slane %v5430_v13, 4  ;;  %v3013_v52 = vperm.slane %v3009_v44, %v4796_v42 }
 0x6c2   : > { %v3635_v47 = vperm.slane %v3629_v41, %v4796_v42  ;;  %v3647_v34 = vsel %vm610_vm1, %v3639_v38, %v3646_v40  ;;  %v3644_v25 = vrot.slane %v3639_v38, 4 }
 0x6c3   : > { %v3022_v16 = vrot.slane %v3013_v52, 4 }
 0x6c4   : > { %v3643_v33 = vsel %vm610_vm1, %v3635_v47, %v3642_v17  ;;  %v3645_v22 = vsel %vm610_vm1, %v3644_v25, %v3627_v58  ;;  %v3640_v1 = vrot.slane %v3635_v47, 4 }
 0x6c6   : > { %3745 = vxpose.xlu2.b32.end [2/2] (short) (narrow) %v3647_v34, 8  ;;  %v3641_v24 = vsel %vm610_vm1, %v3640_v1, %v3623_v48 }
 0x6c8   : > { %3681 = vxpose.xlu0.b32.end [2/2] (short) (narrow) %v3643_v33, 8 }
 0x6ce   : > { %3712 = vxpose.xlu2.b32.start [1/2] (short) (narrow) %v3589_v9, 8 }
 0x6d0   : > { %2856 = vxpose.xlu0.b32.start.end [1/1] (short) (narrow) %v5417_v51, 8  ;;  %v3002_v51 = vrot.slane %v5435_v21, 4 }
 0x6d2   : > { %v3003_v37 = vsel %vm610_vm1, %v3002_v51, %v2904_v49 }
 0x6d6   : > { %3713 = vxpose.xlu2.b32.end [2/2] (short) (narrow) %v3645_v22, 8 }
 0x6d8   : > { %1904 = vxpose.xlu0.b32.start.end [1/1] (short) (narrow) %v5422_v62, 16  ;;  %v3007_v62 = vperm.slane %v3003_v37, %v4781_v32 }
 0x6da   : > { %v3014_v4 = vrot.slane %v3007_v62, 4 }
 0x6de   : > { %3648 = vxpose.xlu2.b32.start [1/2] (short) (narrow) %v3585_v3, 8 }
 0x6e4   : > { %v4140_v39 = vpop.permute.xlu1 %4139 }
 0x6e5   : > { %v4142_v27 = vmul.f32 %v4140_v39, %v4730_v6  ;;  %v4143_v19 = vmul.f32 %v4140_v39, %v4733_v8 }
 0x6e6   : > { %3649 = vxpose.xlu2.b32.end [2/2] (short) (narrow) %v3641_v24, 8 }
 0x6e8   : > { %1936 = vxpose.xlu0.b32.start.end [1/1] (short) (narrow) %v5424_v14, 16 }
 0x757   : > { %v3760_v20 = vpop.trf.xlu2 }
 0x758   : > { %v3782_v30 = vrot.slane %v3760_v20, 4 }
 0x764   : > { %v3696_v31 = vpop.trf.xlu0 }
 0x765   : > { %v3783_v55 = vsel %vm610_vm1, %v3782_v30, %v3696_v31 }
 0x766   : > { %v3787_v14 = vperm.slane %v3783_v55, %v4781_v32 }
 0x767   : > { %v3728_v35 = vpop.trf.xlu2 }
 0x768   : > { %v3776_v21 = vrot.slane %v3728_v35, 4  ;;  %v3788_v2 = vrot.slane %v3787_v14, 4 }
 0x774   : > { %v2872_v36 = vpop.trf.xlu0 }
 0x775   : > { %v2997_v43 = vsel %vm610_vm1, %v2996_v54, %v2872_v36 }
 0x776   : > { %v3001_v61 = vperm.slane %v2997_v43, %v4781_v32 }
 0x777   : > { %v3664_v59 = vpop.trf.xlu2 }
 0x778   : > { %v3015_v60 = vsel %vm610_vm1, %v3014_v4, %v3001_v61  ;;  %v3777_v53 = vsel %vm610_vm1, %v3776_v21, %v3664_v59 }
 0x779   : > { %v3019_v5 = vperm.slane %v3015_v60, %v4796_v42  ;;  %v3781_v13 = vperm.slane %v3777_v53, %v4781_v32 }
 0x77b   : > { %v3789_v12 = vsel %vm610_vm1, %v3788_v2, %v3781_v13  ;;  %v3020_v7 = vrot.slane %v3019_v5, 4  ;;  %v3023_v63 = vsel %vm610_vm1, %v3019_v5, %v3022_v16 }
 0x77c   : > { %v3793_v15 = vperm.slane %v3789_v12, %v4796_v42  ;;  %v1920_v57 = vpop.trf.xlu0 }
 0x77d   : > { %v3021_v10 = vsel %vm610_vm1, %v3020_v7, %v3013_v52  ;;  %v1968_v50 = vrot.slane %v1920_v57, 4  ;;  %v1973_v45 = vperm.slane %v1920_v57, %v4781_v32 }
 0x77e   : > { %4521 = vmatpush.msk.msrb.mxu0 %vm3799_vm6, %v3793_v15  ;;  %v3794_v0 = vrot.slane %v3793_v15, 4 }
 0x77f   : > { %4522 = vmatmul.msk.f32.vlgmr.msrb.gmra.mxu0 %vm908_vm2, %v3021_v10  ;;  %v1969_v58 = vsel %vm610_vm1, 0.0, %v1968_v50  ;;  %v1990_v47 = vrot.slane %v1973_v45, 4 }
 0x780   : > { %v3795_v23 = vsel %vm610_vm1, 0.0, %v3794_v0  ;;  %v1977_v41 = vperm.slane %v1969_v58, %v4781_v32 }
 0x781   : > { %4523 = vmatpush.msk.msra.mxu1 %vm3799_vm6, %v3795_v23 }
 0x782   : > { %4524 = vmatmul.msk.f32.vlgmr.msra.gmra.mxu1 %vm908_vm2, %v3023_v63  ;;  %v2002_v9 = vrot.slane %v1977_v41, 4 }
 0x784   : > { %v1921_v56 = vpop.trf.xlu0 }
 0x785   : > { %v2020_v44 = vrot.slane %v1921_v56, 4  ;;  %v2025_v46 = vperm.slane %v1921_v56, %v4781_v32 }
 0x787   : > { %v2021_v33 = vsel %vm610_vm1, 0.0, %v2020_v44  ;;  %v2042_v20 = vrot.slane %v2025_v46, 4 }
 0x788   : > { %v2029_v26 = vperm.slane %v2021_v33, %v4781_v32 }
 0x78a   : > { %v2054_v62 = vrot.slane %v2029_v26, 4 }
 0x78c   : > { %v1952_v28 = vpop.trf.xlu0 }
 0x78d   : > { %v1978_v29 = vrot.slane %v1952_v28, 4  ;;  %v1983_v40 = vperm.slane %v1952_v28, %v4781_v32 }
 0x78f   : > { %v1979_v38 = vsel %vm610_vm1, 0.0, %v1978_v29  ;;  %v1988_v25 = vrot.slane %v1983_v40, 4  ;;  %v1991_v3 = vsel %vm610_vm1, %v1983_v40, %v1990_v47 }
 0x790   : > { %v1987_v34 = vperm.slane %v1979_v38, %v4781_v32  ;;  %v1999_v35 = vperm.slane %v1991_v3, %v4796_v42 }
 0x791   : > { %v1989_v49 = vsel %vm610_vm1, %v1988_v25, %v1973_v45 }
 0x792   : > { %v2000_v1 = vrot.slane %v1987_v34, 4  ;;  %v2003_v51 = vsel %vm610_vm1, %v1987_v34, %v2002_v9  ;;  %v5527_v36 = vperm.slane %v1989_v49, %v4796_v42  ;;  %v2014_v59 = vrot.slane %v1999_v35, 4 }
 0x793   : > { %v5530_v52 = vperm.slane %v2003_v51, %v4796_v42 }
 0x794   : > { %v1953_v48 = vpop.trf.xlu0  ;;  %v2001_v55 = vsel %vm610_vm1, %v2000_v1, %v1977_v41  ;;  %v2012_v5 = vrot.slane %v5527_v36, 4  ;;  %v2015_v63 = vsel %vm610_vm1, 0.0, %v2014_v59 }
 0x795   : > { %v2030_v17 = vrot.slane %v1953_v48, 4  ;;  %v2035_v22 = vperm.slane %v1953_v48, %v4781_v32  ;;  %v5537_v61 = vperm.slane %v2001_v55, %v4796_v42  ;;  %v2018_v13 = vrot.slane %v5530_v52, 4 }
 0x796   : > { %v2013_v50 = vsel %vm610_vm1, 0.0, %v2012_v5 }
 0x797   : > { %v2031_v24 = vsel %vm610_vm1, 0.0, %v2030_v17  ;;  %v2040_v31 = vrot.slane %v2035_v22, 4  ;;  %v2043_v14 = vsel %vm610_vm1, %v2035_v22, %v2042_v20  ;;  %v2016_v15 = vrot.slane %v5537_v61, 4 }
 0x798   : > { %v2039_v37 = vperm.slane %v2031_v24, %v4781_v32  ;;  %v5540_v53 = vperm.slane %v2043_v14, %v4796_v42  ;;  %v2019_v57 = vsel %vm610_vm1, 0.0, %v2018_v13 }
 0x799   : > { %v2041_v21 = vsel %vm610_vm1, %v2040_v31, %v2025_v46  ;;  %v2017_v17 = vsel %vm610_vm1, 0.0, %v2016_v15 }
 0x79a   : > { %v2052_v60 = vrot.slane %v2039_v37, 4  ;;  %v2055_v2 = vsel %vm610_vm1, %v2039_v37, %v2054_v62  ;;  %v5547_v12 = vperm.slane %v2041_v21, %v4796_v42 }
 0x79b   : > { %v5553_v0 = vperm.slane %v2055_v2, %v4796_v42 }
 0x79c   : > { %v2053_v10 = vsel %vm610_vm1, %v2052_v60, %v2029_v26  ;;  %v2064_v28 = vrot.slane %v5547_v12, 4 }
 0x79d   : > { %v5561_v29 = vperm.slane %v2053_v10, %v4796_v42  ;;  %v2070_v34 = vrot.slane %v5553_v0, 4 }
 0x79e   : > { %v5581_v24 = vsel %vm610_vm1, 0.0, %v2064_v28 }
 0x79f   : > { %v2068_v26 = vrot.slane %v5561_v29, 4  ;;  %v2071_v37 = vsel %vm610_vm1, 0.0, %v2070_v34 }
 0x7fc   : > { %v3820_v18 = vpop.f32.mrf.mxu0 }
 0x7fd   : > { %3849 = vxpose.xlu1.b32.start.end [1/1] (short) (narrow) %v3820_v18, 16 }
 0x7ff   : > { %v3846_v11 = vpop.f32.mrf.mxu1 }
 0x800   : > { %3881 = vxpose.xlu2.b32.start.end [1/1] (short) (narrow) %v3846_v11, 16  ;;  %v2066_v11 = vrot.slane %v5540_v53, 4 }
 0x802   : > { %v5570_v47 = vsel %vm610_vm1, 0.0, %v2066_v11 }
 0x85f   : > { %4146 = vrot.lane.b32.xlu1 %v4142_v27, %s4639_s25 }
 0x867   : > { %4148 = vrot.lane.b32.xlu1 %v4143_v19, %s4639_s25 }
 0x899   : > { %v3897_v30 = vpop.trf.xlu2 }
 0x89a   : > { %v3923_v54 = vrot.slane %v3897_v30, 4  ;;  %v3928_v4 = vperm.slane %v3897_v30, %v4781_v32 }
 0x89c   : > { %v3924_v43 = vsel %vm610_vm1, 0.0, %v3923_v54  ;;  %v3933_v7 = vrot.slane %v3928_v4, 4 }
 0x89d   : > { %v3932_v16 = vperm.slane %v3924_v43, %v4781_v32 }
 0x89f   : > { %v3945_v56 = vrot.slane %v3932_v16, 4 }
 0x8a1   : > { %v3865_v23 = vpop.trf.xlu1  ;;  %v3898_v18 = vpop.trf.xlu2 }
 0x8a2   : > { %v3913_v39 = vrot.slane %v3865_v23, 4  ;;  %v3918_v27 = vperm.slane %v3865_v23, %v4781_v32  ;;  %v3975_v19 = vrot.slane %v3898_v18, 4  ;;  %v3980_v40 = vperm.slane %v3898_v18, %v4781_v32 }
 0x8a4   : > { %v3914_v58 = vsel %vm610_vm1, 0.0, %v3913_v39  ;;  %v3934_v45 = vsel %vm610_vm1, %v3933_v7, %v3918_v27  ;;  %v3935_v44 = vrot.slane %v3918_v27, 4  ;;  %v3976_v41 = vsel %vm610_vm1, 0.0, %v3975_v19 }
 0x8a5   : > { %v3922_v38 = vperm.slane %v3914_v58, %v4781_v32  ;;  %v3940_v48 = vperm.slane %v3934_v45, %v4796_v42  ;;  %v3984_v1 = vperm.slane %v3976_v41, %v4781_v32  ;;  %v3985_v31 = vrot.slane %v3980_v40, 4 }
 0x8a6   : > { %v3936_v33 = vsel %vm610_vm1, %v3928_v4, %v3935_v44 }
 0x8a7   : > { %v3944_v46 = vperm.slane %v3936_v33, %v4796_v42  ;;  %v3946_v9 = vsel %vm610_vm1, %v3945_v56, %v3922_v38  ;;  %v3947_v25 = vrot.slane %v3922_v38, 4  ;;  %v3957_v22 = vrot.slane %v3940_v48, 4 }
 0x8a8   : > { %v3952_v3 = vperm.slane %v3946_v9, %v4796_v42  ;;  %v4017_v5 = vadd.f32 %v3940_v48, %v5527_v36 }
 0x8a9   : > { %v3948_v20 = vsel %vm610_vm1, %v3932_v16, %v3947_v25  ;;  %v3959_v49 = vrot.slane %v3944_v46, 4  ;;  %v4019_v51 = vadd.f32 %v3944_v46, %v1999_v35  ;;  %v3866_v30 = vpop.trf.xlu1  ;;  %v3958_v55 = vsel %vm610_vm1, 0.0, %v3957_v22 }
 0x8aa   : > { %v3956_v62 = vperm.slane %v3948_v20, %v4796_v42  ;;  %v3961_v54 = vrot.slane %v3952_v3, 4  ;;  %v3965_v4 = vrot.slane %v3866_v30, 4  ;;  %v3970_v21 = vperm.slane %v3866_v30, %v4781_v32 }
 0x8ab   : > { %v3960_v14 = vsel %vm610_vm1, 0.0, %v3959_v49  ;;  %v4033_v43 = vrot.slane %v4019_v51, 4  ;;  %v3997_v35 = vrot.slane %v3984_v1, 4  ;;  %v4018_v13 = vadd.f32 %v3958_v55, %v2013_v50 }
 0x8ac   : > { %v3963_v59 = vrot.slane %v3956_v62, 4  ;;  %v4020_v60 = vadd.f32 %v3960_v14, %v2015_v63  ;;  %v4023_v2 = vadd.f32 %v3956_v62, %v5530_v52  ;;  %v3966_v16 = vsel %vm610_vm1, 0.0, %v3965_v4 }
 0x8ad   : > { %v3986_v7 = vsel %vm610_vm1, %v3985_v31, %v3970_v21  ;;  %v3962_v15 = vsel %vm610_vm1, 0.0, %v3961_v54  ;;  %v3974_v18 = vperm.slane %v3966_v16, %v4781_v32  ;;  %v4034_v11 = vsel %vm610_vm1, %v4033_v43, %v4017_v5 }
 0x8ae   : > { %v3964_v10 = vsel %vm610_vm1, 0.0, %v3963_v59  ;;  %v4039_v23 = vrot.slane %v4020_v60, 4  ;;  %v4045_v63 = vrot.slane %v4023_v2, 4  ;;  %v3987_v39 = vrot.slane %v3970_v21, 4 }
 0x8af   : > { %v3992_v52 = vperm.slane %v3986_v7, %v4796_v42  ;;  %v4024_v27 = vadd.f32 %v3964_v10, %v2019_v57  ;;  %v3998_v36 = vsel %vm610_vm1, %v3997_v35, %v3974_v18  ;;  %v3999_v19 = vrot.slane %v3974_v18, 4 }
 0x8b0   : > { %v4040_v56 = vsel %vm610_vm1, %v4039_v23, %v4018_v13  ;;  %v4021_v28 = vadd.f32 %v3952_v3, %v5537_v61  ;;  %v2069_v50 = vsel %vm610_vm1, 0.0, %v2068_v26  ;;  %v3988_v58 = vsel %vm610_vm1, %v3980_v40, %v3987_v39 }
 0x8b1   : > { %v4004_v45 = vperm.slane %v3998_v36, %v4796_v42  ;;  %v3996_v44 = vperm.slane %v3988_v58, %v4796_v42  ;;  %v4000_v38 = vsel %vm610_vm1, %v3984_v1, %v3999_v19  ;;  %v4009_v48 = vrot.slane %v3992_v52, 4 }
 0x8b2   : > { %v4044_v57 = vperm.slane %v4040_v56, %v4781_v32  ;;  %v4022_v41 = vadd.f32 %v3962_v15, %v2017_v17  ;;  %v4008_v34 = vperm.slane %v4000_v38, %v4796_v42  ;;  %v4038_v46 = vperm.slane %v4034_v11, %v4781_v32 }
 0x8b3   : > { %v4013_v33 = vrot.slane %v4004_v45, 4  ;;  %v4011_v61 = vrot.slane %v3996_v44, 4  ;;  %v4027_v9 = vadd.f32 %v3996_v44, %v5540_v53  ;;  %v4046_v40 = vsel %vm610_vm1, %v4045_v63, %v4021_v28  ;;  %v4592_v44 = vld [vmem:[%s5690_s7] ss:$0 sm:$0xff] }
 0x8b4   : > { %v4051_v25 = vrot.slane %v4024_v27, 4  ;;  %v4015_v22 = vrot.slane %v4008_v34, 4  ;;  %v4025_v26 = vadd.f32 %v3992_v52, %v5547_v12  ;;  %v4031_v3 = vadd.f32 %v4008_v34, %v5553_v0 }
 0x8b5   : > { %v4057_v1 = vrot.slane %v4044_v57, 4  ;;  %v4010_v20 = vsel %vm610_vm1, 0.0, %v4009_v48  ;;  %v4012_v17 = vsel %vm610_vm1, 0.0, %v4011_v61  ;;  %v4014_v49 = vsel %vm610_vm1, 0.0, %v4013_v33 }
 0x8b6   : > { %v4052_v51 = vsel %vm610_vm1, %v4051_v25, %v4022_v41  ;;  %v4016_v31 = vsel %vm610_vm1, 0.0, %v4015_v22  ;;  %v4028_v53 = vadd.f32 %v4012_v17, %v5570_v47  ;;  %v4073_v30 = vrot.slane %v4027_v9, 4 }
 0x8b7   : > { %v4056_v62 = vperm.slane %v4052_v51, %v4781_v32  ;;  %v4032_v55 = vadd.f32 %v4016_v31, %v2071_v37  ;;  %v4085_v12 = vrot.slane %v4031_v3, 4  ;;  %v4050_v0 = vperm.slane %v4046_v40, %v4781_v32 }
 0x8b8   : > { %v4058_v54 = vsel %vm610_vm1, %v4057_v1, %v4038_v46  ;;  %v4026_v14 = vadd.f32 %v4010_v20, %v5581_v24  ;;  %v4079_v43 = vrot.slane %v4028_v53, 4  ;;  %v4029_v59 = vadd.f32 %v4004_v45, %v5561_v29 }
 0x8b9   : > { %v4062_v4 = vperm.slane %v4058_v54, %v4796_v42  ;;  %v4063_v21 = vrot.slane %v4056_v62, 4  ;;  %v4030_v60 = vadd.f32 %v4014_v49, %v2069_v50  ;;  %v4091_v2 = vrot.slane %v4032_v55, 4 }
 0x8ba   : > { %v4074_v47 = vsel %vm610_vm1, %v4073_v30, %v4025_v26  ;;  %v4080_v5 = vsel %vm610_vm1, %v4079_v43, %v4026_v14  ;;  %v4086_v24 = vsel %vm610_vm1, %v4085_v12, %v4029_v59 }
 0x8bb   : > { %v4064_v35 = vsel %vm610_vm1, %v4063_v21, %v4050_v0  ;;  %v4071_v37 = vrot.slane %v4062_v4, 4  ;;  %v4084_v16 = vperm.slane %v4080_v5, %v4781_v32  ;;  %v4092_v7 = vsel %vm610_vm1, %v4091_v2, %v4030_v60 }
 0x8bc   : > { %v4068_v13 = vperm.slane %v4064_v35, %v4796_v42  ;;  %v4096_v15 = vperm.slane %v4092_v7, %v4781_v32  ;;  %v4078_v23 = vperm.slane %v4074_v47, %v4781_v32  ;;  %v4090_v11 = vperm.slane %v4086_v24, %v4781_v32 }
 0x8bd   : > { %v4097_v18 = vrot.slane %v4084_v16, 4 }
 0x8be   : > { %v4072_v29 = vsel %vm610_vm1, %v4068_v13, %v4071_v37  ;;  %v4069_v10 = vrot.slane %v4068_v13, 4  ;;  %v4103_v63 = vrot.slane %v4096_v15, 4 }
 0x8bf   : > { %4115 = vrot.lane.b32.xlu2 %v4072_v29, %s4640_s26  ;;  %v4098_v39 = vsel %vm610_vm1, %v4097_v18, %v4078_v23 }
 0x8c0   : > { %v4070_v52 = vsel %vm610_vm1, %v4069_v10, %v4062_v4  ;;  %v4102_v27 = vperm.slane %v4098_v39, %v4796_v42  ;;  %v4104_v36 = vsel %vm610_vm1, %v4103_v63, %v4090_v11 }
 0x8c1   : > { %v4108_v19 = vperm.slane %v4104_v36, %v4796_v42 }
 0x8c2   : > { %v4111_v56 = vrot.slane %v4102_v27, 4 }
 0x8c3   : > { %v4109_v28 = vrot.slane %v4108_v19, 4 }
 0x8c4   : > { %v4112_v50 = vsel %vm610_vm1, %v4108_v19, %v4111_v56 }
 0x8c5   : > { %4117 = vrot.lane.b32.xlu0 %v4112_v50, %s4640_s26  ;;  %v4110_v58 = vsel %vm610_vm1, %v4109_v28, %v4102_v27  ;;  %v4641_v28 = vmov 16.0  }
 0x8d1   : > { %v4147_v45 = vpop.permute.xlu1 %4146 }
 0x8d2   : > { %v4152_v32 = vsel %vm4129_vm7, %v4147_v45, 0.0 }
 0x8d9   : > { %v4149_v41 = vpop.permute.xlu1 %4148 }
 0x8da   : > { %v4155_v34 = vsel %vm4129_vm7, %v4149_v41, 0.0 }
 0x8e8   : > { %4153 = vadd.xlane.f32.xlu2 %v4152_v32 }
 0x919   : > { %v4116_v38 = vpop.permute.xlu2 %4115 }
 0x91a   : > { %v4121_v48 = vsel %vm518_vm0, %v4070_v52, %v4116_v38 }
 0x91b   : > { %v4127_v42 = vmul.f32 %v4592_v44, %v4121_v48 }
 0x91d   : > { %v4130_v57 = vsel %vm4129_vm7, %v4127_v42, 0.0 }
 0x91e   : > { %4131 = vadd.xlane.f32.xlu1 %v4130_v57 }
 0x926   : > { %4156 = vadd.xlane.f32.xlu1 %v4155_v34 }
 0x937   : > { %v4118_v33 = vpop.permute.xlu0 %4117 }
 0x938   : > { %v4122_v46 = vsel %vm518_vm0, %v4110_v58, %v4118_v33 }
 0x939   : > { %v4128_v61 = vmul.f32 %v4592_v44, %v4122_v46 }
 0x93b   : > { %v4133_v9 = vsel %vm4129_vm7, %v4128_v61, 0.0 }
 0x93c   : > { %4134 = vadd.xlane.f32.xlu0 %v4133_v9 }
 0x95b   : > { %v4154_v40 = vpop.xlane.xlu2 %4153 }
 0x991   : > { %v4132_v25 = vpop.xlane.xlu1 %4131 }
 0x992   : > { %v4158_v22 = vadd.f32 %v4154_v40, %v4132_v25 }
 0x994   : > { %v4525_v26 = vmul.f32 -1.442695, %v4158_v22  ;;  %v4594_v22 = vld [vmem:[%s5693_s10] ss:$0 sm:$0xff] }
 0x996   : > { %4611 = vpow2.f32 %v4525_v26 }
 0x999   : > { %v4157_v0 = vpop.xlane.xlu1 %4156 }
 0x99c   : > { %v4612_v3 = vpop.eup %4611 }
 0x99d   : > { %v4166_v1 = vadd.f32 1.0, %v4612_v3 }
 0x99f   : > { %4613 = vrcp.f32 %v4166_v1  ;;  %v4179_v51 = vand.u32 2147483648, %v4166_v1  ;;  %v4177_v53 = vand.u32 2147483647, %v4166_v1  ;;  %vm4173_vm9 = vweird.f32 %v4166_v1 }
 0x9a1   : > { %v4180_v62 = vor.u32 1.1754944e-38, %v4179_v51  ;;  %vm4178_vm11 = vcmp.eq.f32.partialorder %v4177_v53, 8.507059e+37 }
 0x9a5   : > { %v4614_v20 = vpop.eup %4613 }
 0x9a6   : > { %v4169_v17 = vmul.f32 %v4614_v20, %v4166_v1  ;;  %vm4174_vm8 = vweird.f32 %v4614_v20 }
 0x9a7   : > { %vm4175_vm10 = vmor %vm4173_vm9, %vm4174_vm8 }
 0x9a8   : > { %v4170_v49 = vsub.f32 1.0, %v4169_v17 }
 0x9aa   : > { %v4171_v31 = vmul.f32 %v4614_v20, %v4170_v49 }
 0x9ac   : > { %v4172_v30 = vadd.f32 %v4614_v20, %v4171_v31 }
 0x9ae   : > { %v4176_v55 = vsel %vm4175_vm10, %v4614_v20, %v4172_v30 }
 0x9af   : > { %v4181_v12 = vsel %vm4178_vm11, %v4180_v62, %v4176_v55  ;;  %v4135_v54 = vpop.xlane.xlu0 %4134 }
 0x9b0   : > { %v4200_v14 = vsub.f32 1.0, %v4181_v12  ;;  %v4159_v43 = vadd.f32 %v4157_v0, %v4135_v54  ;;  %v4198_v23 = vmul.f32 %v4181_v12, %v4730_v6 }
 0x9b2   : > { %v4202_v4 = vmul.f32 %v4200_v14, %v4121_v48  ;;  %v4526_v21 = vmul.f32 -1.442695, %v4159_v43 }
 0x9b4   : > { %4206 = vrot.lane.b32.xlu2 %v4202_v4, %s4638_s24  ;;  %4615 = vpow2.f32 %v4526_v21 }
 0x9ba   : > { %v4616_v59 = vpop.eup %4615 }
 0x9bb   : > { %v4167_v60 = vadd.f32 1.0, %v4616_v59 }
 0x9bd   : > { %4617 = vrcp.f32 %v4167_v60  ;;  %v4194_v37 = vand.u32 2147483648, %v4167_v60  ;;  %v4192_v13 = vand.u32 2147483647, %v4167_v60  ;;  %vm4188_vm13 = vweird.f32 %v4167_v60 }
 0x9be   : > { %4619 = vrcp.f32 %v4641_v28 }
 0x9bf   : > { %v4195_v24 = vor.u32 1.1754944e-38, %v4194_v37  ;;  %vm4193_vm15 = vcmp.eq.f32.partialorder %v4192_v13, 8.507059e+37 }
 0x9c3   : > { %v4618_v2 = vpop.eup %4617 }
 0x9c4   : > { %v4184_v47 = vmul.f32 %v4618_v2, %v4167_v60  ;;  %vm4189_vm12 = vweird.f32 %v4618_v2  ;;  %v4620_v6 = vpop.eup %4619 }
 0x9c5   : > { %vm4190_vm14 = vmor %vm4188_vm13, %vm4189_vm12  ;;  %v4229_v50 = vmul.f32 16.0, %v4620_v6  ;;  %vm4233_vm0 = vweird.f32 %v4620_v6 }
 0x9c6   : > { %v4185_v35 = vsub.f32 1.0, %v4184_v47 }
 0x9c7   : > { %v4230_v58 = vsub.f32 1.0, %v4229_v50 }
 0x9c8   : > { %v4186_v5 = vmul.f32 %v4618_v2, %v4185_v35 }
 0x9c9   : > { %v4231_v45 = vmul.f32 %v4620_v6, %v4230_v58 }
 0x9ca   : > { %v4187_v16 = vadd.f32 %v4618_v2, %v4186_v5 }
 0x9cb   : > { %v4232_v32 = vadd.f32 %v4620_v6, %v4231_v45 }
 0x9cc   : > { %v4191_v7 = vsel %vm4190_vm14, %v4618_v2, %v4187_v16 }
 0x9cd   : > { %v4196_v15 = vsel %vm4193_vm15, %v4195_v24, %v4191_v7 }
 0x9ce   : > { %v4201_v29 = vsub.f32 1.0, %v4196_v15  ;;  %v4199_v63 = vmul.f32 %v4196_v15, %v4733_v8  ;;  %v4234_v8 = vsel %vm4233_vm0, %v4620_v6, %v4232_v32 }
 0x9d0   : > { %v4203_v10 = vmul.f32 %v4201_v29, %v4122_v46  ;;  %v4593_v46 = vld [vmem:[%s5692_s9] ss:$0 sm:$0xff] }
 0x9d2   : > { %4208 = vrot.lane.b32.xlu1 %v4203_v10, %s4638_s24 }
 0xa0e   : > { %v4207_v18 = vpop.permute.xlu2 %4206 }
 0xa0f   : > { %v4212_v11 = vadd.f32 %v4207_v18, %v4198_v23 }
 0xa11   : > { %4216 = vrot.lane.b32.xlu0 %v4212_v11, %s4639_s25 }
 0xa44   : > { %v4209_v39 = vpop.permute.xlu1 %4208 }
 0xa45   : > { %v4213_v52 = vadd.f32 %v4209_v39, %v4199_v63 }
 0xa47   : > { %4218 = vrot.lane.b32.xlu2 %v4213_v52, %s4639_s25 }
 0xa83   : > { %v4217_v27 = vpop.permute.xlu0 %4216 }
 0xa84   : > { %v4222_v36 = vsel %vm4129_vm7, %v4217_v27, 0.0 }
 0xa85   : > { %4223 = vadd.xlane.f32.xlu0 %v4222_v36 }
 0xaa1   : > { %v4219_v19 = vpop.permute.xlu2 %4218 }
 0xaa2   : > { %v4225_v56 = vsel %vm4129_vm7, %v4219_v19, 0.0 }
 0xaa3   : > { %4226 = vadd.xlane.f32.xlu1 %v4225_v56 }
 0xabc   : > { %4284 = vrot.lane.b32.xlu1 %v4593_v46, %s4638_s24 }
 0xaf8   : > { %v4224_v44 = vpop.xlane.xlu0 %4223 }
 0xaf9   : > { %v4235_v38 = vmul.f32 %v4234_v8, %v4224_v44 }
 0xafb   : > { %v4237_v48 = vsub.f32 %v4212_v11, %v4235_v38 }
 0xafd   : > { %v4239_v42 = vmul.f32 %v4237_v48, %v4237_v48 }
 0xaff   : > { %4243 = vrot.lane.b32.xlu2 %v4239_v42, %s4639_s25 }
 0xb16   : > { %v4227_v57 = vpop.xlane.xlu1 %4226 }
 0xb17   : > { %v4236_v41 = vmul.f32 %v4234_v8, %v4227_v57 }
 0xb19   : > { %v4238_v34 = vsub.f32 %v4213_v52, %v4236_v41 }
 0xb1b   : > { %v4240_v33 = vmul.f32 %v4238_v34, %v4238_v34 }
 0xb1d   : > { %4245 = vrot.lane.b32.xlu2 %v4240_v33, %s4639_s25 }
 0xb2e   : > { %v4285_v4 = vpop.permute.xlu1 %4284 }
 0xb59   : > { %v4244_v61 = vpop.permute.xlu2 %4243 }
 0xb5a   : > { %v4249_v9 = vsel %vm4129_vm7, %v4244_v61, 0.0 }
 0xb5b   : > { %4250 = vadd.xlane.f32.xlu2 %v4249_v9 }
 0xb77   : > { %v4246_v40 = vpop.permute.xlu2 %4245 }
 0xb78   : > { %v4252_v25 = vsel %vm4129_vm7, %v4246_v40, 0.0 }
 0xb79   : > { %4253 = vadd.xlane.f32.xlu0 %v4252_v25 }
 0xb8d   : > { %4292 = vrot.lane.b32.xlu0 %v4594_v22, %s4638_s24 }
 0xbce   : > { %v4251_v26 = vpop.xlane.xlu2 %4250 }
 0xbcf   : > { %v4255_v3 = vmul.f32 %v4251_v26, %v4234_v8 }
 0xbd1   : > { %v4257_v1 = vadd.f32 1e-05, %v4255_v3 }
 0xbd3   : > { %4621 = vrsqrt.f32 %v4257_v1  ;;  %vm4265_vm2 = vweird.f32 %v4257_v1 }
 0xbd9   : > { %v4622_v20 = vpop.eup %4621 }
 0xbda   : > { %v4260_v17 = vmul.f32 %v4622_v20, %v4257_v1  ;;  %vm4266_vm1 = vweird.f32 %v4622_v20 }
 0xbdb   : > { %vm4267_vm3 = vmor %vm4265_vm2, %vm4266_vm1 }
 0xbdc   : > { %v4261_v49 = vmul.f32 %v4622_v20, %v4260_v17 }
 0xbde   : > { %v4262_v51 = vmul.f32 0.5, %v4261_v49 }
 0xbe0   : > { %v4263_v30 = vsub.f32 1.5, %v4262_v51 }
 0xbe2   : > { %v4264_v55 = vmul.f32 %v4622_v20, %v4263_v30 }
 0xbe4   : > { %v4268_v0 = vsel %vm4267_vm3, %v4622_v20, %v4264_v55 }
 0xbe5   : > { %v4279_v14 = vmul.f32 %v4268_v0, %v4237_v48 }
 0xbe7   : > { %v4287_v59 = vmul.f32 %v4285_v4, %v4279_v14 }
 0xbec   : > { %v4254_v31 = vpop.xlane.xlu0 %4253 }
 0xbed   : > { %v4256_v53 = vmul.f32 %v4254_v31, %v4234_v8 }
 0xbef   : > { %v4258_v62 = vadd.f32 1e-05, %v4256_v53 }
 0xbf1   : > { %4623 = vrsqrt.f32 %v4258_v62  ;;  %vm4275_vm5 = vweird.f32 %v4258_v62 }
 0xbf7   : > { %v4624_v12 = vpop.eup %4623 }
 0xbf8   : > { %v4270_v54 = vmul.f32 %v4624_v12, %v4258_v62  ;;  %vm4276_vm4 = vweird.f32 %v4624_v12 }
 0xbf9   : > { %vm4277_vm6 = vmor %vm4275_vm5, %vm4276_vm4 }
 0xbfa   : > { %v4271_v43 = vmul.f32 %v4624_v12, %v4270_v54 }
 0xbfc   : > { %v4272_v21 = vmul.f32 0.5, %v4271_v43 }
 0xbfe   : > { %v4273_v60 = vsub.f32 1.5, %v4272_v21 }
 0xbff   : > { %v4293_v2 = vpop.permute.xlu0 %4292 }
 0xc00   : > { %v4274_v47 = vmul.f32 %v4624_v12, %v4273_v60  ;;  %v4295_v35 = vadd.f32 %v4293_v2, %v4287_v59 }
 0xc02   : > { %v4278_v37 = vsel %vm4277_vm6, %v4624_v12, %v4274_v47  ;;  %v4299_v5 = vmul.f32 0.01, %v4295_v35  ;;  %vm4297_vm8 = vcmp.ge.f32.partialorder %v4295_v35, 0.0 }
 0xc03   : > { %v4280_v13 = vmul.f32 %v4278_v37, %v4238_v34 }
 0xc04   : > { %v4301_v16 = vsel %vm4297_vm8, %v4295_v35, %v4299_v5 }
 0xc05   : > { %v4288_v24 = vmul.f32 %v4285_v4, %v4280_v13  ;;  %4305 = vrot.lane.b32.xlu2 %v4301_v16, %s4639_s25 }
 0xc07   : > { %v4296_v7 = vadd.f32 %v4293_v2, %v4288_v24 }
 0xc09   : > { %v4300_v15 = vmul.f32 0.01, %v4296_v7  ;;  %vm4298_vm9 = vcmp.ge.f32.partialorder %v4296_v7, 0.0 }
 0xc0b   : > { %v4302_v29 = vsel %vm4298_vm9, %v4296_v7, %v4300_v15 }
 0xc0c   : > { %4307 = vrot.lane.b32.xlu1 %v4302_v29, %s4639_s25 }
 0xc5f   : > { %v4306_v10 = vpop.permute.xlu2 %4305 }
 0xc60   : > { %4311 = vst.msk [vmem:[%s435_s16] sm:$0xff] %vm4129_vm7, %v4306_v10 }
 0xc7e   : > { %v4308_v23 = vpop.permute.xlu1 %4307 }
 0xc7f   : > { %4312 = vst.msk [vmem:[%s435_s16 + $0x8] sm:$0xff] %vm4129_vm7, %v4308_v23 }
 0xc80 PF: > { %s21_s17 = sadd.s32 1, %s4631_s17  }
 0xc81   : > { %p18_p5 = scmp.ge.s32.totalorder %s21_s17, 4  }
 0xc83   :  { %20 = sbr.rel (!%p18_p5) target bundleno = 1 (0x1), region = 100 }

</bundles_post_ra>
